<compile_context>
chip_gen: v5e
topology: v5e:2x2
jax: 0.10.0
libtpu: 0.0.40
codegen_flags: <defaults>
</compile_context>

<pallas_src>
import jax
import jax.numpy as jnp
from jax.experimental import pallas as pl
from jax.experimental.pallas import tpu as pltpu

LN_EPS = 1e-5  # PyTorch nn.LayerNorm default
_ALIGN = 16    # batch/sublane alignment (safe for bf16 packing)


def _round_up(n, m):
    return ((n + m - 1) // m) * m


def _cdiv(a, b):
    return -(-a // b)


def _layernorm(h, gamma, beta):
    # Two-moment LayerNorm over the feature axis (biased variance, like
    # torch.nn.LayerNorm).  mean and E[x^2] reductions are independent, so
    # both can issue back-to-back on the XLU.  All f32.
    mean = jnp.mean(h, axis=-1, keepdims=True)
    mean_sq = jnp.mean(h * h, axis=-1, keepdims=True)
    var = mean_sq - mean * mean
    inv = jax.lax.rsqrt(var + LN_EPS)
    return (h - mean) * inv * gamma + beta


def actor_kernel(x_ref,
                 w1_ref, b1_ref, g1_ref, be1_ref,
                 w2_ref, b2_ref, g2_ref, be2_ref,
                 w3_ref, b3_ref,
                 o_ref):
    # x arrives as bf16; matmuls accumulate in f32; LN/ReLU/tanh in f32.
    x = x_ref[...]

    # Layer 1: Linear -> LayerNorm -> ReLU
    h = jnp.dot(x, w1_ref[...], preferred_element_type=jnp.float32) + b1_ref[...]
    h = jnp.maximum(_layernorm(h, g1_ref[...], be1_ref[...]), 0.0)

    # Layer 2: Linear -> LayerNorm -> ReLU
    h = jnp.dot(h.astype(jnp.bfloat16), w2_ref[...],
                preferred_element_type=jnp.float32) + b2_ref[...]
    h = jnp.maximum(_layernorm(h, g2_ref[...], be2_ref[...]), 0.0)

    # Output layer (lane-padded to 128): Linear -> tanh
    y = jnp.dot(h.astype(jnp.bfloat16), w3_ref[...],
                preferred_element_type=jnp.float32) + b3_ref[...]
    o_ref[...] = jnp.tanh(y).astype(o_ref.dtype)


def prepare_actor_params(params):
    """One-time parameter prep: cast weights to bf16 and pad for the MXU /
    lane-dense output.  Do this once, outside the per-call forward path."""
    w1, b1, g1, be1, w2, b2, g2, be2, w3, b3 = params
    S, H = w1.shape
    A = w3.shape[1]
    Sp = _round_up(S, _ALIGN)      # contraction depth of layer 1 (no 128-pad)
    Ap = _round_up(A, 128)         # lane-dense output store

    w1_p = jnp.zeros((Sp, H), jnp.bfloat16).at[:S, :].set(w1.astype(jnp.bfloat16))
    w2_b = w2.astype(jnp.bfloat16)
    w3_p = jnp.zeros((H, Ap), jnp.bfloat16).at[:, :A].set(w3.astype(jnp.bfloat16))
    b3_p = jnp.zeros((1, Ap), jnp.float32).at[:, :A].set(b3)

    return {
        "state_dim": S, "action_dim": A, "hidden": H, "Sp": Sp, "Ap": Ap,
        "tensors": (w1_p, b1, g1, be1, w2_b, b2, g2, be2, w3_p, b3_p),
    }


def actor_forward(x, prepared, *, batch_tile=512, out_dtype=jnp.float32):
    """x: (B, state_dim) float32 -> (B, action_dim) `out_dtype`."""
    B, S = x.shape
    assert S == prepared["state_dim"]
    Sp, Ap, H = prepared["Sp"], prepared["Ap"], prepared["hidden"]
    A = prepared["action_dim"]
    tensors = prepared["tensors"]

    # --- adaptive batch tiling ---------------------------------------------
    Bmin = _round_up(B, _ALIGN)
    max_tile = max(_round_up(batch_tile, _ALIGN), _ALIGN)
    n_tiles = _cdiv(Bmin, max_tile)
    if n_tiles == 1 and Bmin >= 512:
        n_tiles = 2                       # keep both v7x TensorCores busy
    tile = _round_up(_cdiv(Bmin, n_tiles), _ALIGN)
    Bp = tile * n_tiles

    # bf16 x; pad batch/state only as needed (pad rows/cols are zero).
    xb = x.astype(jnp.bfloat16)
    if (Bp, Sp) != (B, S):
        x_p = jnp.zeros((Bp, Sp), jnp.bfloat16).at[:B, :S].set(xb)
    else:
        x_p = xb

    # Weights / biases / LN params are whole-array blocks resident across
    # the batch grid (constant index map).
    full = lambda shape: pl.BlockSpec(shape, lambda i: (0, 0))

    out = pl.pallas_call(
        actor_kernel,
        out_shape=jax.ShapeDtypeStruct((Bp, Ap), out_dtype),
        grid_spec=pltpu.PrefetchScalarGridSpec(
            num_scalar_prefetch=0,
            grid=(n_tiles,),
            in_specs=[
                pl.BlockSpec((tile, Sp), lambda i: (i, 0)),                # x (bf16)
                full((Sp, H)), full((1, H)), full((1, H)), full((1, H)),   # layer1 + norm1
                full((H, H)), full((1, H)), full((1, H)), full((1, H)),    # layer2 + norm2
                full((H, Ap)), full((1, Ap)),                              # output layer (padded)
            ],
            out_specs=pl.BlockSpec((tile, Ap), lambda i: (i, 0)),
        ),
        compiler_params=pltpu.CompilerParams(
            dimension_semantics=("parallel",)),
    )(x_p, *tensors)

    return out[:B, :A]


def init_actor_params(key, state_dim, action_dim, hidden=512):
    """Deterministic init matching the module: xavier_uniform weights,
    zero biases, LayerNorm gamma=1 / beta=0."""
    def xavier(k, fan_in, fan_out):
        bound = jnp.sqrt(6.0 / (fan_in + fan_out))
        # stored as (in, out) — transpose of PyTorch's (out, in); same bound.
        return jax.random.uniform(k, (fan_in, fan_out), jnp.float32,
                                  minval=-bound, maxval=bound)

    k1, k2, k3 = jax.random.split(key, 3)
    w1 = xavier(k1, state_dim, hidden)
    b1 = jnp.zeros((1, hidden), jnp.float32)
    g1 = jnp.ones((1, hidden), jnp.float32)
    be1 = jnp.zeros((1, hidden), jnp.float32)

    w2 = xavier(k2, hidden, hidden)
    b2 = jnp.zeros((1, hidden), jnp.float32)
    g2 = jnp.ones((1, hidden), jnp.float32)
    be2 = jnp.zeros((1, hidden), jnp.float32)

    w3 = xavier(k3, hidden, action_dim)
    b3 = jnp.zeros((1, action_dim), jnp.float32)
    return (w1, b1, g1, be1, w2, b2, g2, be2, w3, b3)


def _ref_layernorm(h, gamma, beta):
    mean = jnp.mean(h, axis=-1, keepdims=True)
    centered = h - mean
    var = jnp.mean(centered * centered, axis=-1, keepdims=True)
    return centered * jax.lax.rsqrt(var + LN_EPS) * gamma + beta


def actor_reference(x, params):
    """Plain-JAX reference (standard centered LayerNorm) mirroring the
    kernel's bf16-matmul-input / f32-accumulate precision."""
    w1, b1, g1, be1, w2, b2, g2, be2, w3, b3 = params
    bf = jnp.bfloat16
    h = jnp.dot(x.astype(bf), w1.astype(bf),
                preferred_element_type=jnp.float32) + b1
    h = jnp.maximum(_ref_layernorm(h, g1, be1), 0.0)
    h = jnp.dot(h.astype(bf), w2.astype(bf),
                preferred_element_type=jnp.float32) + b2
    h = jnp.maximum(_ref_layernorm(h, g2, be2), 0.0)
    y = jnp.dot(h.astype(bf), w3.astype(bf),
                preferred_element_type=jnp.float32) + b3
    return jnp.tanh(y)


if __name__ == "__main__":
    state_dim, action_dim = 32, 8

    key = jax.random.PRNGKey(0)
    pkey, xkey = jax.random.split(key)
    params = init_actor_params(pkey, state_dim, action_dim)
    prepared = prepare_actor_params(params)   # one-time weight cast/pad

    ok = True
    for batch in (8, 20):   # aligned and ragged (exercise batch padding)
        x = jax.random.normal(jax.random.fold_in(xkey, batch),
                              (batch, state_dim), jnp.float32)
        out = jax.block_until_ready(actor_forward(x, prepared))
        ref = actor_reference(x, params)
        assert out.shape == (batch, action_dim)
        ok = ok and bool(jnp.allclose(out, ref, atol=1e-3, rtol=1e-3))

    assert ok, "mismatch vs reference"
    print("KERNEL_OK")
</pallas_src>

<mosaic_0001>
module attributes {stable_mosaic.version = 11 : i64} {
  func.func @actor_kernel(%arg0: i32, %arg1: memref<16x32xbf16, #tpu.memory_space<vmem>>, %arg2: memref<32x512xbf16, #tpu.memory_space<vmem>>, %arg3: memref<1x512xf32, #tpu.memory_space<vmem>>, %arg4: memref<1x512xf32, #tpu.memory_space<vmem>>, %arg5: memref<1x512xf32, #tpu.memory_space<vmem>>, %arg6: memref<512x512xbf16, #tpu.memory_space<vmem>>, %arg7: memref<1x512xf32, #tpu.memory_space<vmem>>, %arg8: memref<1x512xf32, #tpu.memory_space<vmem>>, %arg9: memref<1x512xf32, #tpu.memory_space<vmem>>, %arg10: memref<512x128xbf16, #tpu.memory_space<vmem>>, %arg11: memref<1x128xf32, #tpu.memory_space<vmem>>, %arg12: memref<16x128xf32, #tpu.memory_space<vmem>>) attributes {dimension_semantics = [#tpu.dimension_semantics<parallel>], iteration_bounds = array<i64: 1>, scalar_prefetch = 0 : i64, scratch_operands = 0 : i64, tpu.core_type = #tpu.core_type<tc>, window_params = [{transform_indices = @transform_0, window_bounds = array<i64: 16, 32>}, {pipeline_mode = #tpu.pipeline_mode<synchronous>, transform_indices = @transform_1, window_bounds = array<i64: 32, 512>}, {pipeline_mode = #tpu.pipeline_mode<synchronous>, transform_indices = @transform_2, window_bounds = array<i64: 1, 512>}, {pipeline_mode = #tpu.pipeline_mode<synchronous>, transform_indices = @transform_3, window_bounds = array<i64: 1, 512>}, {pipeline_mode = #tpu.pipeline_mode<synchronous>, transform_indices = @transform_4, window_bounds = array<i64: 1, 512>}, {pipeline_mode = #tpu.pipeline_mode<synchronous>, transform_indices = @transform_5, window_bounds = array<i64: 512, 512>}, {pipeline_mode = #tpu.pipeline_mode<synchronous>, transform_indices = @transform_6, window_bounds = array<i64: 1, 512>}, {pipeline_mode = #tpu.pipeline_mode<synchronous>, transform_indices = @transform_7, window_bounds = array<i64: 1, 512>}, {pipeline_mode = #tpu.pipeline_mode<synchronous>, transform_indices = @transform_8, window_bounds = array<i64: 1, 512>}, {pipeline_mode = #tpu.pipeline_mode<synchronous>, transform_indices = @transform_9, window_bounds = array<i64: 512, 128>}, {pipeline_mode = #tpu.pipeline_mode<synchronous>, transform_indices = @transform_10, window_bounds = array<i64: 1, 128>}, {transform_indices = @transform_11, window_bounds = array<i64: 16, 128>}]} {
    %c0 = arith.constant 0 : index
    %c0_0 = arith.constant 0 : index
    %0 = vector.load %arg1[%c0, %c0_0] : memref<16x32xbf16, #tpu.memory_space<vmem>>, vector<16x32xbf16>
    %c0_1 = arith.constant 0 : index
    %c0_2 = arith.constant 0 : index
    %1 = vector.load %arg2[%c0_1, %c0_2] : memref<32x512xbf16, #tpu.memory_space<vmem>>, vector<32x512xbf16>
    %cst = arith.constant dense<0.000000e+00> : vector<16x512xf32>
    %2 = tpu.matmul %0, %1, %cst {dimension_numbers = #tpu.dot_dimension_numbers<[1], [0], [0], [1], [0, 0, 1, 1], [], []>} : vector<16x32xbf16>, vector<32x512xbf16>, vector<16x512xf32> -> vector<16x512xf32>
    %c0_3 = arith.constant 0 : index
    %c0_4 = arith.constant 0 : index
    %3 = vector.load %arg3[%c0_3, %c0_4] : memref<1x512xf32, #tpu.memory_space<vmem>>, vector<1x512xf32>
    %4 = vector.broadcast %3 : vector<1x512xf32> to vector<16x512xf32>
    %5 = arith.addf %2, %4 : vector<16x512xf32>
    %c0_5 = arith.constant 0 : index
    %c0_6 = arith.constant 0 : index
    %6 = vector.load %arg4[%c0_5, %c0_6] : memref<1x512xf32, #tpu.memory_space<vmem>>, vector<1x512xf32>
    %c0_7 = arith.constant 0 : index
    %c0_8 = arith.constant 0 : index
    %7 = vector.load %arg5[%c0_7, %c0_8] : memref<1x512xf32, #tpu.memory_space<vmem>>, vector<1x512xf32>
    %cst_9 = arith.constant dense<0.000000e+00> : vector<16xf32>
    %8 = vector.multi_reduction <add>, %5, %cst_9 [1] : vector<16x512xf32> to vector<16xf32>
    %9 = vector.shape_cast %8 : vector<16xf32> to vector<16x1xf32>
    %cst_10 = arith.constant 5.120000e+02 : f32
    %10 = vector.broadcast %cst_10 : f32 to vector<16x1xf32>
    %11 = arith.divf %9, %10 : vector<16x1xf32>
    %12 = arith.mulf %5, %5 : vector<16x512xf32>
    %cst_11 = arith.constant dense<0.000000e+00> : vector<16xf32>
    %13 = vector.multi_reduction <add>, %12, %cst_11 [1] : vector<16x512xf32> to vector<16xf32>
    %14 = vector.shape_cast %13 : vector<16xf32> to vector<16x1xf32>
    %cst_12 = arith.constant 5.120000e+02 : f32
    %15 = vector.broadcast %cst_12 : f32 to vector<16x1xf32>
    %16 = arith.divf %14, %15 : vector<16x1xf32>
    %17 = arith.mulf %11, %11 : vector<16x1xf32>
    %18 = arith.subf %16, %17 : vector<16x1xf32>
    %cst_13 = arith.constant 9.99999974E-6 : f32
    %19 = vector.broadcast %cst_13 : f32 to vector<16x1xf32>
    %20 = arith.addf %18, %19 : vector<16x1xf32>
    %21 = math.rsqrt %20 : vector<16x1xf32>
    %22 = vector.broadcast %11 : vector<16x1xf32> to vector<16x512xf32>
    %23 = arith.subf %5, %22 : vector<16x512xf32>
    %24 = vector.broadcast %21 : vector<16x1xf32> to vector<16x512xf32>
    %25 = arith.mulf %23, %24 : vector<16x512xf32>
    %26 = vector.broadcast %6 : vector<1x512xf32> to vector<16x512xf32>
    %27 = arith.mulf %25, %26 : vector<16x512xf32>
    %28 = vector.broadcast %7 : vector<1x512xf32> to vector<16x512xf32>
    %29 = arith.addf %27, %28 : vector<16x512xf32>
    %cst_14 = arith.constant 0.000000e+00 : f32
    %30 = vector.broadcast %cst_14 : f32 to vector<16x512xf32>
    %31 = arith.maximumf %29, %30 : vector<16x512xf32>
    %32 = arith.truncf %31 : vector<16x512xf32> to vector<16x512xbf16>
    %c0_15 = arith.constant 0 : index
    %c0_16 = arith.constant 0 : index
    %33 = vector.load %arg6[%c0_15, %c0_16] : memref<512x512xbf16, #tpu.memory_space<vmem>>, vector<512x512xbf16>
    %cst_17 = arith.constant dense<0.000000e+00> : vector<16x512xf32>
    %34 = tpu.matmul %32, %33, %cst_17 {dimension_numbers = #tpu.dot_dimension_numbers<[1], [0], [0], [1], [0, 0, 1, 1], [], []>} : vector<16x512xbf16>, vector<512x512xbf16>, vector<16x512xf32> -> vector<16x512xf32>
    %c0_18 = arith.constant 0 : index
    %c0_19 = arith.constant 0 : index
    %35 = vector.load %arg7[%c0_18, %c0_19] : memref<1x512xf32, #tpu.memory_space<vmem>>, vector<1x512xf32>
    %36 = vector.broadcast %35 : vector<1x512xf32> to vector<16x512xf32>
    %37 = arith.addf %34, %36 : vector<16x512xf32>
    %c0_20 = arith.constant 0 : index
    %c0_21 = arith.constant 0 : index
    %38 = vector.load %arg8[%c0_20, %c0_21] : memref<1x512xf32, #tpu.memory_space<vmem>>, vector<1x512xf32>
    %c0_22 = arith.constant 0 : index
    %c0_23 = arith.constant 0 : index
    %39 = vector.load %arg9[%c0_22, %c0_23] : memref<1x512xf32, #tpu.memory_space<vmem>>, vector<1x512xf32>
    %cst_24 = arith.constant dense<0.000000e+00> : vector<16xf32>
    %40 = vector.multi_reduction <add>, %37, %cst_24 [1] : vector<16x512xf32> to vector<16xf32>
    %41 = vector.shape_cast %40 : vector<16xf32> to vector<16x1xf32>
    %cst_25 = arith.constant 5.120000e+02 : f32
    %42 = vector.broadcast %cst_25 : f32 to vector<16x1xf32>
    %43 = arith.divf %41, %42 : vector<16x1xf32>
    %44 = arith.mulf %37, %37 : vector<16x512xf32>
    %cst_26 = arith.constant dense<0.000000e+00> : vector<16xf32>
    %45 = vector.multi_reduction <add>, %44, %cst_26 [1] : vector<16x512xf32> to vector<16xf32>
    %46 = vector.shape_cast %45 : vector<16xf32> to vector<16x1xf32>
    %cst_27 = arith.constant 5.120000e+02 : f32
    %47 = vector.broadcast %cst_27 : f32 to vector<16x1xf32>
    %48 = arith.divf %46, %47 : vector<16x1xf32>
    %49 = arith.mulf %43, %43 : vector<16x1xf32>
    %50 = arith.subf %48, %49 : vector<16x1xf32>
    %cst_28 = arith.constant 9.99999974E-6 : f32
    %51 = vector.broadcast %cst_28 : f32 to vector<16x1xf32>
    %52 = arith.addf %50, %51 : vector<16x1xf32>
    %53 = math.rsqrt %52 : vector<16x1xf32>
    %54 = vector.broadcast %43 : vector<16x1xf32> to vector<16x512xf32>
    %55 = arith.subf %37, %54 : vector<16x512xf32>
    %56 = vector.broadcast %53 : vector<16x1xf32> to vector<16x512xf32>
    %57 = arith.mulf %55, %56 : vector<16x512xf32>
    %58 = vector.broadcast %38 : vector<1x512xf32> to vector<16x512xf32>
    %59 = arith.mulf %57, %58 : vector<16x512xf32>
    %60 = vector.broadcast %39 : vector<1x512xf32> to vector<16x512xf32>
    %61 = arith.addf %59, %60 : vector<16x512xf32>
    %cst_29 = arith.constant 0.000000e+00 : f32
    %62 = vector.broadcast %cst_29 : f32 to vector<16x512xf32>
    %63 = arith.maximumf %61, %62 : vector<16x512xf32>
    %64 = arith.truncf %63 : vector<16x512xf32> to vector<16x512xbf16>
    %c0_30 = arith.constant 0 : index
    %c0_31 = arith.constant 0 : index
    %65 = vector.load %arg10[%c0_30, %c0_31] : memref<512x128xbf16, #tpu.memory_space<vmem>>, vector<512x128xbf16>
    %cst_32 = arith.constant dense<0.000000e+00> : vector<16x128xf32>
    %66 = tpu.matmul %64, %65, %cst_32 {dimension_numbers = #tpu.dot_dimension_numbers<[1], [0], [0], [1], [0, 0, 1, 1], [], []>} : vector<16x512xbf16>, vector<512x128xbf16>, vector<16x128xf32> -> vector<16x128xf32>
    %c0_33 = arith.constant 0 : index
    %c0_34 = arith.constant 0 : index
    %67 = vector.load %arg11[%c0_33, %c0_34] : memref<1x128xf32, #tpu.memory_space<vmem>>, vector<1x128xf32>
    %68 = vector.broadcast %67 : vector<1x128xf32> to vector<16x128xf32>
    %69 = arith.addf %66, %68 : vector<16x128xf32>
    %70 = math.tanh %69 : vector<16x128xf32>
    %c0_35 = arith.constant 0 : index
    %c0_36 = arith.constant 0 : index
    %71 = vector.load %arg12[%c0_35, %c0_36] : memref<16x128xf32, #tpu.memory_space<vmem>>, vector<16x128xf32>
    tpu.vector_store %arg12[%c0_35, %c0_36], %70 {strides = array<i32>} : memref<16x128xf32, #tpu.memory_space<vmem>>, vector<16x128xf32>,
    return
  }
  func.func @transform_0(%arg0: i32) -> (i32, i32) {
    %c0_i32 = arith.constant 0 : i32
    %c0_i32_0 = arith.constant 0 : i32
    return %arg0, %c0_i32 : i32, i32
  }
  func.func @transform_1(%arg0: i32) -> (i32, i32) {
    %c0_i32 = arith.constant 0 : i32
    %c0_i32_0 = arith.constant 0 : i32
    %c0_i32_1 = arith.constant 0 : i32
    return %c0_i32, %c0_i32_0 : i32, i32
  }
  func.func @transform_2(%arg0: i32) -> (i32, i32) {
    %c0_i32 = arith.constant 0 : i32
    %c0_i32_0 = arith.constant 0 : i32
    %c0_i32_1 = arith.constant 0 : i32
    return %c0_i32, %c0_i32_0 : i32, i32
  }
  func.func @transform_3(%arg0: i32) -> (i32, i32) {
    %c0_i32 = arith.constant 0 : i32
    %c0_i32_0 = arith.constant 0 : i32
    %c0_i32_1 = arith.constant 0 : i32
    return %c0_i32, %c0_i32_0 : i32, i32
  }
  func.func @transform_4(%arg0: i32) -> (i32, i32) {
    %c0_i32 = arith.constant 0 : i32
    %c0_i32_0 = arith.constant 0 : i32
    %c0_i32_1 = arith.constant 0 : i32
    return %c0_i32, %c0_i32_0 : i32, i32
  }
  func.func @transform_5(%arg0: i32) -> (i32, i32) {
    %c0_i32 = arith.constant 0 : i32
    %c0_i32_0 = arith.constant 0 : i32
    %c0_i32_1 = arith.constant 0 : i32
    return %c0_i32, %c0_i32_0 : i32, i32
  }
  func.func @transform_6(%arg0: i32) -> (i32, i32) {
    %c0_i32 = arith.constant 0 : i32
    %c0_i32_0 = arith.constant 0 : i32
    %c0_i32_1 = arith.constant 0 : i32
    return %c0_i32, %c0_i32_0 : i32, i32
  }
  func.func @transform_7(%arg0: i32) -> (i32, i32) {
    %c0_i32 = arith.constant 0 : i32
    %c0_i32_0 = arith.constant 0 : i32
    %c0_i32_1 = arith.constant 0 : i32
    return %c0_i32, %c0_i32_0 : i32, i32
  }
  func.func @transform_8(%arg0: i32) -> (i32, i32) {
    %c0_i32 = arith.constant 0 : i32
    %c0_i32_0 = arith.constant 0 : i32
    %c0_i32_1 = arith.constant 0 : i32
    return %c0_i32, %c0_i32_0 : i32, i32
  }
  func.func @transform_9(%arg0: i32) -> (i32, i32) {
    %c0_i32 = arith.constant 0 : i32
    %c0_i32_0 = arith.constant 0 : i32
    %c0_i32_1 = arith.constant 0 : i32
    return %c0_i32, %c0_i32_0 : i32, i32
  }
  func.func @transform_10(%arg0: i32) -> (i32, i32) {
    %c0_i32 = arith.constant 0 : i32
    %c0_i32_0 = arith.constant 0 : i32
    %c0_i32_1 = arith.constant 0 : i32
    return %c0_i32, %c0_i32_0 : i32, i32
  }
  func.func @transform_11(%arg0: i32) -> (i32, i32) {
    %c0_i32 = arith.constant 0 : i32
    %c0_i32_0 = arith.constant 0 : i32
    return %arg0, %c0_i32 : i32, i32
  }
}

</mosaic_0001>

<bundles_post_ra>
// kernel: tpu_custom_call.1
= control target key start
LH: loop header
LB: loop body
LE: loop exit
PB: predicated region body
PF: predicated region fallthrough
CT: control target
= control target key end

     0   :  { %16 = vsyncpa [#allocation3], 0  ;;  %s3325_s0 = inlined_call_operand.hbm [shape: bf16[16,32], index: 0, kind: input, shape index: {}]   ;;  %s3326_s1 = inlined_call_operand.hbm [shape: bf16[32,512], index: 1, kind: input, shape index: {}]   ;;  %s3327_s2 = inlined_call_operand.hbm [shape: f32[1,512], index: 2, kind: input, shape index: {}]   ;;  %s3328_s3 = inlined_call_operand.hbm [shape: f32[1,512], index: 3, kind: input, shape index: {}]   ;;  %s3329_s4 = inlined_call_operand.hbm [shape: f32[1,512], index: 4, kind: input, shape index: {}]   ;;  %s3330_s5 = inlined_call_operand.hbm [shape: bf16[512,512], index: 5, kind: input, shape index: {}]   ;;  %s3331_s6 = inlined_call_operand.vmem [shape: f32[1,512], index: 6, kind: input, shape index: {}]   ;;  %s3332_s7 = inlined_call_operand.hbm [shape: f32[1,512], index: 7, kind: input, shape index: {}]   ;;  %s3333_s8 = inlined_call_operand.hbm [shape: f32[1,512], index: 8, kind: input, shape index: {}]   ;;  %s3334_s9 = inlined_call_operand.hbm [shape: bf16[512,128], index: 9, kind: input, shape index: {}]   ;;  %s3335_s10 = inlined_call_operand.vmem [shape: f32[1,128], index: 10, kind: input, shape index: {}]   ;;  %s3336_s11 = inlined_call_operand.hbm [shape: f32[16,128], index: 11, kind: output, shape index: {}]  }
   0x1   :  { %17 = vsyncpa [#allocation6], 0 }
   0x2   :  { %18 = vsyncpa [#allocation9], 0 }
   0x3   :  { %19 = vsyncpa [#allocation12], 0 }
   0x4   :  { %20 = vsyncpa [#allocation15], 0  ;;  %s39_s19 = sshll.u32 %s3326_s1, 4  ;;  %s40_s19 = int_to_ptr.hbm [resolvable:$true] %s39_s19 }
   0x5   :  { %21 = vsyncpa [#allocation4], 0  ;;  %s3024_s20 = smov [#allocation5]   ;;  %s64_s24 = sshll.u32 %s3328_s3, 4  ;;  %s65_s24 = int_to_ptr.hbm [resolvable:$true] %s64_s24 }
   0x6   :  { %s41_s21 = sshll.u32 %s3024_s20, 4  ;;  %s3025_s25 = smov 256   ;;  %s42_s21 = int_to_ptr.vmem [resolvable:$true] %s41_s21 }
   0x7   :  { %s3026_s26 = smov 16   ;;  %s3027_s27 = smov [#allocation8]  }
   0x8   :  { %47 = dma.hbm_to_vmem [thread:$0]  %s40_s19, 1024, %s42_s21, [#allocation6], %s3025_s25, %s3025_s25, %s3026_s26  }
   0x9   :  { %s66_s28 = sshll.u32 %s3027_s27, 4  ;;  %s85_s12 = sshll.u32 %s3330_s5, 4  ;;  %s67_s28 = int_to_ptr.vmem [resolvable:$true] %s66_s28  ;;  %s86_s12 = int_to_ptr.hbm [resolvable:$true] %s85_s12 }
   0xa   :  { %69 = dma.hbm_to_vmem [thread:$0]  %s65_s24, 64, %s67_s28, [#allocation9]  }
   0xb   :  { %s112_s14 = sshll.u32 %s3333_s8, 4  ;;  %s3028_s15 = smov [#allocation11]   ;;  %s113_s14 = int_to_ptr.hbm [resolvable:$true] %s112_s14 }
   0xc   :  { %s87_s16 = sshll.u32 %s3028_s15, 4  ;;  %s3029_s3 = smov [#allocation14]   ;;  %s88_s16 = int_to_ptr.vmem [resolvable:$true] %s87_s16 }
   0xd   :  { %93 = dma.hbm_to_vmem [thread:$0]  %s86_s12, 16384, %s88_s16, [#allocation12], %s3025_s25, %s3025_s25, %s3026_s26  }
   0xe   :  { %s114_s17 = sshll.u32 %s3029_s3, 4  ;;  %s26_s20 = sshll.u32 %s3325_s0, 4  ;;  %s115_s17 = int_to_ptr.vmem [resolvable:$true] %s114_s17  ;;  %s27_s20 = int_to_ptr.hbm [resolvable:$true] %s26_s20 }
   0xf   :  { %117 = dma.hbm_to_vmem [thread:$0]  %s113_s14, 64, %s115_s17, [#allocation15]  }
  0x10   :  { %s3030_s5 = smov [#allocation2]   ;;  %s53_s8 = sshll.u32 %s3327_s2, 4  ;;  %s54_s8 = int_to_ptr.hbm [resolvable:$true] %s53_s8 }
  0x11   :  { %s28_s21 = sshll.u32 %s3030_s5, 4  ;;  %s3031_s24 = smov 64   ;;  %s29_s21 = int_to_ptr.vmem [resolvable:$true] %s28_s21 }
  0x12   :  { %s3032_s27 = smov 4   ;;  %s3033_s25 = smov [#allocation7]  }
  0x13   :  { %34 = dma.hbm_to_vmem [thread:$0]  %s27_s20, 128, %s29_s21, [#allocation3], %s3031_s24, %s3031_s24, %s3032_s27  }
  0x14   :  { %s55_s26 = sshll.u32 %s3033_s25, 4  ;;  %s75_s0 = sshll.u32 %s3329_s4, 4  ;;  %s56_s26 = int_to_ptr.vmem [resolvable:$true] %s55_s26  ;;  %s76_s0 = int_to_ptr.hbm [resolvable:$true] %s75_s0 }
  0x15   :  { %58 = dma.hbm_to_vmem [thread:$0]  %s54_s8, 64, %s56_s26, [#allocation6]  }
  0x16   :  { %s101_s1 = sshll.u32 %s3332_s7, 4  ;;  %s3034_s13 = smov [#allocation10]   ;;  %s102_s1 = int_to_ptr.hbm [resolvable:$true] %s101_s1 }
  0x17   :  { %s77_s14 = sshll.u32 %s3034_s13, 4  ;;  %s3035_s2 = smov [#allocation13]   ;;  %s78_s14 = int_to_ptr.vmem [resolvable:$true] %s77_s14 }
  0x18   :  { %80 = dma.hbm_to_vmem [thread:$0]  %s76_s0, 64, %s78_s14, [#allocation9]  }
  0x19   :  { %s103_s15 = sshll.u32 %s3035_s2, 4  ;;  %s122_s17 = sshll.u32 %s3334_s9, 4  ;;  %s104_s15 = int_to_ptr.vmem [resolvable:$true] %s103_s15  ;;  %s123_s17 = int_to_ptr.hbm [resolvable:$true] %s122_s17 }
  0x1a   :  { %106 = dma.hbm_to_vmem [thread:$0]  %s102_s1, 64, %s104_s15, [#allocation12]  }
  0x1b   :  { %s3036_s4 = smov [#allocation16]  }
  0x1c   :  { %s124_s18 = sshll.u32 %s3036_s4, 4  ;;  %s125_s18 = int_to_ptr.vmem [resolvable:$true] %s124_s18 }
  0x1d   :  { %130 = dma.hbm_to_vmem [thread:$0]  %s123_s17, 4096, %s125_s18, [#allocation15], %s3031_s24, %s3031_s24, %s3032_s27  }
  0x1e   :  { %3012 = dma.done.wait [#allocation3], 128  }
  0x1f   :  { %3013 = vsyncadd [#allocation3], 4294967168 }
  0x20   :  { %3014 = dma.done.wait [#allocation6], 1088  }
  0x21   :  { %3015 = vsyncadd [#allocation6], 4294966208 }
  0x22   :  { %3016 = dma.done.wait [#allocation9], 128  }
  0x23   :  { %3017 = vsyncadd [#allocation9], 4294967168 }
  0x24   :  { %3018 = dma.done.wait [#allocation12], 16448  }
  0x25   :  { %3019 = vsyncadd [#allocation12], 4294950848 }
  0x26   :  { %3020 = dma.done.wait [#allocation15], 4160  }
  0x27   :  { %3021 = vsyncadd [#allocation15], 4294963136  ;;  %v1913_v0 = vld [vmem:[#allocation5 + $0x20] sm:$0xf]  ;;  %v2578_v1 = vld [vmem:[#allocation5 + $0x2c] sm:$0xf0] }
  0x28   :  { %v2576_v2 = vld [vmem:[#allocation5 + $0x24] sm:$0xf]  ;;  %v1914_v3 = vor.u32 %v2578_v1, %v1913_v0  ;;  %v1915_v4 = vld [vmem:[#allocation5 + $0x30] sm:$0xf0]  ;;  %v1921_v5 = vld [vmem:[#allocation5 + $0x28] sm:$0xf] }
  0x29   :  { %v2579_v6 = vld [vmem:[#allocation5 + $0x34] sm:$0xf0]  ;;  %v1918_v7 = vor.u32 %v2576_v2, %v1915_v4  ;;  %v2577_v9 = vld [vmem:[#allocation5 + $0x2c] sm:$0xf]  ;;  %v1923_v10 = vld [vmem:[#allocation5 + $0x38] sm:$0xf0] }
  0x2a   :  { %v1922_v8 = vor.u32 %v2579_v6, %v1921_v5  ;;  %v1897_v11 = vld [vmem:[#allocation5] sm:$0xf]  ;;  %245 = vmatpush.bf16.msra.mxu0 %v1914_v3  ;;  %v1926_v12 = vor.u32 %v2577_v9, %v1923_v10  ;;  %v2574_v13 = vld [vmem:[#allocation5 + $0xc] sm:$0xf0]  ;;  %v2572_v14 = vld [vmem:[#allocation5 + $0x4] sm:$0xf] }
  0x2b   :  { %v1899_v15 = vld [vmem:[#allocation5 + $0x10] sm:$0xf0]  ;;  %259 = vmatpush.bf16.msra.mxu1 %v1918_v7  ;;  %v1898_v16 = vor.u32 %v2574_v13, %v1897_v11  ;;  %v1905_v18 = vld [vmem:[#allocation5 + $0x8] sm:$0xf]  ;;  %v2575_v19 = vld [vmem:[#allocation5 + $0x14] sm:$0xf0] }
  0x2c   :  { %273 = vmatpush.bf16.msra.mxu2 %v1922_v8  ;;  %v1902_v17 = vor.u32 %v2572_v14, %v1899_v15  ;;  %v2573_v20 = vld [vmem:[#allocation5 + $0xc] sm:$0xf]  ;;  %287 = vmatpush.bf16.msra.mxu3 %v1926_v12  ;;  %v1906_v21 = vor.u32 %v2575_v19, %v1905_v18  ;;  %v1907_v22 = vld [vmem:[#allocation5 + $0x18] sm:$0xf0]  ;;  %vm235_vm0 = vcmask 261120   ;;  %s1874_s22 = sshll.u32 %s3336_s11, 4  ;;  %s1875_s22 = int_to_ptr.hbm [resolvable:$true] %s1874_s22 }
  0x2d   :  { %v1910_v23 = vor.u32 %v2573_v20, %v1907_v22  ;;  %v2571_v24 = vld [vmem:[#allocation2] sm:$0xff]  ;;  %v3128_v25 = vld [vmem:[#allocation7] sm:$0xf]  ;;  %v2045_v28 = vld [vmem:[#allocation11 + $0xe0] sm:$0xf]  ;;  %s3039_s23 = smov 128  }
  0x2e   :  { %246 = vmatpush.bf16.msra.mxu0 %v1898_v16  ;;  %v182_v26 = vperm.slane %v3128_v25, 0  ;;  %v183_v27 = vperm.slane %v3128_v25, 1  ;;  %v2610_v29 = vld [vmem:[#allocation11 + $0xec] sm:$0xf0]  ;;  %v2173_v30 = vld [vmem:[#allocation11 + $0x1e0] sm:$0xf] }
  0x2f   :  { %260 = vmatpush.bf16.msra.mxu1 %v1902_v17  ;;  %v2046_v31 = vor.u32 %v2610_v29, %v2045_v28  ;;  %v2642_v32 = vld [vmem:[#allocation11 + $0x1ec] sm:$0xf0]  ;;  %v2301_v33 = vld [vmem:[#allocation11 + $0x2e0] sm:$0xf]  ;;  %v184_v16 = vperm.slane %v3128_v25, 2  ;;  %v185_v18 = vperm.slane %v3128_v25, 3 }
  0x30   :  { %274 = vmatpush.bf16.msra.mxu2 %v1906_v21  ;;  %288 = vmatpush.bf16.msra.mxu3 %v1910_v23  ;;  %v2674_v34 = vld [vmem:[#allocation11 + $0x2ec] sm:$0xf0]  ;;  %v2174_v35 = vor.u32 %v2642_v32, %v2173_v30  ;;  %v2429_v37 = vld [vmem:[#allocation11 + $0x3e0] sm:$0xf]  ;;  %s3040_s8 = smov 8  }
  0x31   :  { %1927 = vmatmul.msk.bf16.vlgmr.msra.gmra.mxu0 %vm235_vm0, %v2571_v24  ;;  %v2302_v36 = vor.u32 %v2674_v34, %v2301_v33  ;;  %v2706_v38 = vld [vmem:[#allocation11 + $0x3ec] sm:$0xf0]  ;;  %v2029_v39 = vld [vmem:[#allocation11 + $0xc0] sm:$0xf] }
  0x32   :  { %1928 = vmatmul.msk.bf16.vlgmr.msra.gmra.mxu1 %vm235_vm0, %v2571_v24  ;;  %1202 = vmatpush.bf16.msrb.mxu0 %v2046_v31  ;;  %v2430_v40 = vor.u32 %v2706_v38, %v2429_v37  ;;  %v2606_v41 = vld [vmem:[#allocation11 + $0xcc] sm:$0xf0]  ;;  %v2157_v42 = vld [vmem:[#allocation11 + $0x1c0] sm:$0xf] }
  0x33   :  { %1929 = vmatmul.msk.bf16.vlgmr.msra.gmra.mxu2 %vm235_vm0, %v2571_v24  ;;  %1930 = vmatmul.msk.bf16.vlgmr.msra.gmra.mxu3 %vm235_vm0, %v2571_v24  ;;  %v2638_v43 = vld [vmem:[#allocation11 + $0x1cc] sm:$0xf0]  ;;  %v2030_v44 = vor.u32 %v2606_v41, %v2029_v39  ;;  %v2285_v46 = vld [vmem:[#allocation11 + $0x2c0] sm:$0xf] }
  0x34   :  { %1216 = vmatpush.bf16.msrb.mxu1 %v2174_v35  ;;  %1230 = vmatpush.bf16.msrb.mxu2 %v2302_v36  ;;  %v2158_v45 = vor.u32 %v2638_v43, %v2157_v42  ;;  %v2670_v47 = vld [vmem:[#allocation11 + $0x2cc] sm:$0xf0]  ;;  %v2413_v48 = vld [vmem:[#allocation11 + $0x3c0] sm:$0xf] }
  0x35   :  { %1244 = vmatpush.bf16.msrb.mxu3 %v2430_v40  ;;  %v2286_v49 = vor.u32 %v2670_v47, %v2285_v46  ;;  %v2702_v50 = vld [vmem:[#allocation11 + $0x3cc] sm:$0xf0]  ;;  %v2013_v51 = vld [vmem:[#allocation11 + $0xa0] sm:$0xf] }
  0x36   :  { %v2602_v52 = vld [vmem:[#allocation11 + $0xac] sm:$0xf0]  ;;  %v2414_v53 = vor.u32 %v2702_v50, %v2413_v48  ;;  %v2141_v54 = vld [vmem:[#allocation11 + $0x1a0] sm:$0xf]  ;;  %1203 = vmatpush.bf16.msrb.mxu0 %v2030_v44  ;;  %v3037_v50 = vmov 512.0  }
  0x37   :  { %v2634_v55 = vld [vmem:[#allocation11 + $0x1ac] sm:$0xf0]  ;;  %v2269_v56 = vld [vmem:[#allocation11 + $0x2a0] sm:$0xf]  ;;  %v2014_v57 = vor.u32 %v2602_v52, %v2013_v51  ;;  %2758 = vrcp.f32 %v3037_v50 }
  0x38   :  { %v2666_v58 = vld [vmem:[#allocation11 + $0x2ac] sm:$0xf0]  ;;  %v2397_v59 = vld [vmem:[#allocation11 + $0x3a0] sm:$0xf]  ;;  %1217 = vmatpush.bf16.msrb.mxu1 %v2158_v45  ;;  %1231 = vmatpush.bf16.msrb.mxu2 %v2286_v49  ;;  %v2142_v62 = vor.u32 %v2634_v55, %v2141_v54 }
  0x39   :  { %v2698_v60 = vld [vmem:[#allocation11 + $0x3ac] sm:$0xf0]  ;;  %v2270_v63 = vor.u32 %v2666_v58, %v2269_v56  ;;  %v1997_v0 = vld [vmem:[#allocation11 + $0x80] sm:$0xf]  ;;  %1245 = vmatpush.bf16.msrb.mxu3 %v2414_v53 }
  0x3a   :  { %v2598_v1 = vld [vmem:[#allocation11 + $0x8c] sm:$0xf0]  ;;  %v2125_v2 = vld [vmem:[#allocation11 + $0x180] sm:$0xf]  ;;  %v2398_v5 = vor.u32 %v2698_v60, %v2397_v59  ;;  %1204 = vmatpush.bf16.msrb.mxu0 %v2014_v57 }
  0x3b   :  { %v2630_v6 = vld [vmem:[#allocation11 + $0x18c] sm:$0xf0]  ;;  %v2253_v7 = vld [vmem:[#allocation11 + $0x280] sm:$0xf]  ;;  %v1998_v12 = vor.u32 %v2598_v1, %v1997_v0 }
  0x3c   :  { %v2662_v8 = vld [vmem:[#allocation11 + $0x28c] sm:$0xf0]  ;;  %v2381_v10 = vld [vmem:[#allocation11 + $0x380] sm:$0xf]  ;;  %v2126_v13 = vor.u32 %v2630_v6, %v2125_v2  ;;  %1218 = vmatpush.bf16.msrb.mxu1 %v2142_v62  ;;  %1232 = vmatpush.bf16.msrb.mxu2 %v2270_v63 }
  0x3d   :  { %v2694_v11 = vld [vmem:[#allocation11 + $0x38c] sm:$0xf0]  ;;  %v2254_v17 = vor.u32 %v2662_v8, %v2253_v7  ;;  %1246 = vmatpush.bf16.msrb.mxu3 %v2398_v5  ;;  %v1981_v51 = vld [vmem:[#allocation11 + $0x60] sm:$0xf]  ;;  %v3182_v63 = vpop.eup %2758 }
  0x3e   :  { %v2382_v19 = vor.u32 %v2694_v11, %v2381_v10  ;;  %1205 = vmatpush.bf16.msrb.mxu0 %v1998_v12  ;;  %v2594_v52 = vld [vmem:[#allocation11 + $0x6c] sm:$0xf0]  ;;  %v2109_v53 = vld [vmem:[#allocation11 + $0x160] sm:$0xf]  ;;  %vm312_vm1 = vweird.f32 %v3182_v63 }
  0x3f   :  { %v1982_v54 = vor.u32 %v2594_v52, %v1981_v51  ;;  %v2626_v55 = vld [vmem:[#allocation11 + $0x16c] sm:$0xf0]  ;;  %v2237_v56 = vld [vmem:[#allocation11 + $0x260] sm:$0xf]  ;;  %v2672_v52 = vld [vmem:[#allocation11 + $0x2e4] sm:$0xf] }
  0x40   :  { %1219 = vmatpush.bf16.msrb.mxu1 %v2126_v13  ;;  %1233 = vmatpush.bf16.msrb.mxu2 %v2254_v17  ;;  %v2658_v57 = vld [vmem:[#allocation11 + $0x26c] sm:$0xf0]  ;;  %v2110_v58 = vor.u32 %v2626_v55, %v2109_v53  ;;  %v2365_v60 = vld [vmem:[#allocation11 + $0x360] sm:$0xf]  ;;  %v3185_v13 = vmul.f32 512.0, %v3182_v63 }
  0x41   :  { %1247 = vmatpush.bf16.msrb.mxu3 %v2382_v19  ;;  %v2238_v59 = vor.u32 %v2658_v57, %v2237_v56  ;;  %v1965_v0 = vld [vmem:[#allocation11 + $0x40] sm:$0xf]  ;;  %v2590_v1 = vld [vmem:[#allocation11 + $0x4c] sm:$0xf0]  ;;  %v2303_v53 = vld [vmem:[#allocation11 + $0x2f0] sm:$0xf0] }
  0x42   :  { %1206 = vmatpush.bf16.msrb.mxu0 %v1982_v54  ;;  %v2093_v2 = vld [vmem:[#allocation11 + $0x140] sm:$0xf]  ;;  %v2622_v5 = vld [vmem:[#allocation11 + $0x14c] sm:$0xf0]  ;;  %v2704_v54 = vld [vmem:[#allocation11 + $0x3e4] sm:$0xf]  ;;  %v2306_v55 = vor.u32 %v2672_v52, %v2303_v53 }
  0x43   :  { %v2221_v6 = vld [vmem:[#allocation11 + $0x240] sm:$0xf]  ;;  %v2654_v7 = vld [vmem:[#allocation11 + $0x24c] sm:$0xf0]  ;;  %v2094_v8 = vor.u32 %v2622_v5, %v2093_v2  ;;  %v2431_v56 = vld [vmem:[#allocation11 + $0x3f0] sm:$0xf0] }
  0x44   :  { %1220 = vmatpush.bf16.msrb.mxu1 %v2110_v58  ;;  %1234 = vmatpush.bf16.msrb.mxu2 %v2238_v59  ;;  %v2222_v10 = vor.u32 %v2654_v7, %v2221_v6  ;;  %v2349_v11 = vld [vmem:[#allocation11 + $0x340] sm:$0xf]  ;;  %v2686_v12 = vld [vmem:[#allocation11 + $0x34c] sm:$0xf0]  ;;  %v2604_v57 = vld [vmem:[#allocation11 + $0xc4] sm:$0xf]  ;;  %v2434_v59 = vor.u32 %v2704_v54, %v2431_v56 }
  0x45   :  { %v2077_v17 = vld [vmem:[#allocation11 + $0x120] sm:$0xf]  ;;  %v2618_v19 = vld [vmem:[#allocation11 + $0x12c] sm:$0xf0]  ;;  %v2031_v58 = vld [vmem:[#allocation11 + $0xd0] sm:$0xf0] }
  0x46   :  { %v2287_v2 = vld [vmem:[#allocation11 + $0x2d0] sm:$0xf0]  ;;  %v2688_v52 = vld [vmem:[#allocation11 + $0x364] sm:$0xf] }
  0x47   :  { %v2415_v5 = vld [vmem:[#allocation11 + $0x3d0] sm:$0xf0]  ;;  %v2588_v56 = vld [vmem:[#allocation11 + $0x44] sm:$0xf] }
  0x48   :  { %1221 = vmatpush.bf16.msrb.mxu1 %v2094_v8  ;;  %1235 = vmatpush.bf16.msrb.mxu2 %v2222_v10  ;;  %v2600_v10 = vld [vmem:[#allocation11 + $0xa4] sm:$0xf]  ;;  %v2367_v53 = vld [vmem:[#allocation11 + $0x370] sm:$0xf0] }
  0xae   :  { %v248_v61 = vpop.f32.mrf.mxu0 }
  0xaf   :  { %v3134_v3 = vadd.f32 %v248_v61, %v182_v26  ;;  %v262_v4 = vpop.f32.mrf.mxu1  ;;  %v2690_v61 = vld [vmem:[#allocation11 + $0x36c] sm:$0xf0] }
  0xb0   :  { %v3138_v9 = vadd.f32 %v262_v4, %v183_v27  ;;  %v2366_v62 = vor.u32 %v2690_v61, %v2365_v60  ;;  %v1966_v4 = vor.u32 %v2590_v1, %v1965_v0  ;;  %v2034_v60 = vor.u32 %v2604_v57, %v2031_v58  ;;  %v2636_v61 = vld [vmem:[#allocation11 + $0x1c4] sm:$0xf]  ;;  %v1967_v57 = vld [vmem:[#allocation11 + $0x50] sm:$0xf0] }
  0xb1   :  { %v316_v14 = vmul.f32 %v3134_v3, %v3134_v3  ;;  %v2668_v0 = vld [vmem:[#allocation11 + $0x2c4] sm:$0xf] }
  0xb2   :  { %v317_v15 = vmul.f32 %v3138_v9, %v3138_v9  ;;  %v297_v20 = vadd.f32 %v3138_v9, %v3134_v3  ;;  %1248 = vmatpush.bf16.msrb.mxu3 %v2366_v62  ;;  %1207 = vmatpush.bf16.msrb.mxu0 %v1966_v4  ;;  %v2159_v62 = vld [vmem:[#allocation11 + $0x1d0] sm:$0xf0]  ;;  %v2700_v4 = vld [vmem:[#allocation11 + $0x3c4] sm:$0xf]  ;;  %v2290_v6 = vor.u32 %v2668_v0, %v2287_v2 }
  0xb3   :  { %v2162_v1 = vor.u32 %v2636_v61, %v2159_v62  ;;  %v2418_v7 = vor.u32 %v2700_v4, %v2415_v5  ;;  %v2620_v58 = vld [vmem:[#allocation11 + $0x144] sm:$0xf]  ;;  %v2223_v61 = vld [vmem:[#allocation11 + $0x250] sm:$0xf0] }
  0xb4   :  { %v324_v28 = vadd.f32 %v317_v15, %v316_v14  ;;  %v2350_v14 = vor.u32 %v2686_v12, %v2349_v11  ;;  %v1949_v15 = vld [vmem:[#allocation11 + $0x20] sm:$0xf]  ;;  %v2015_v11 = vld [vmem:[#allocation11 + $0xb0] sm:$0xf0]  ;;  %v2632_v12 = vld [vmem:[#allocation11 + $0x1a4] sm:$0xf] }
  0xb5   :  { %v2684_v2 = vld [vmem:[#allocation11 + $0x344] sm:$0xf]  ;;  %v2351_v4 = vld [vmem:[#allocation11 + $0x350] sm:$0xf0] }
  0xb6   :  { %v276_v21 = vpop.f32.mrf.mxu2  ;;  %v290_v23 = vpop.f32.mrf.mxu3  ;;  %1249 = vmatpush.bf16.msrb.mxu3 %v2350_v14  ;;  %v2143_v14 = vld [vmem:[#allocation11 + $0x1b0] sm:$0xf0]  ;;  %v2584_v5 = vld [vmem:[#allocation11 + $0x24] sm:$0xf] }
  0xb7   :  { %v3148_v22 = vadd.f32 %v276_v21, %v184_v16  ;;  %v250_v24 = vpop.f32.mrf.mxu0  ;;  %v3150_v29 = vadd.f32 %v290_v23, %v185_v18  ;;  %v264_v30 = vpop.f32.mrf.mxu1  ;;  %v2650_v21 = vld [vmem:[#allocation11 + $0x22c] sm:$0xf0]  ;;  %v2078_v23 = vor.u32 %v2618_v19, %v2077_v17  ;;  %v2146_v17 = vor.u32 %v2632_v12, %v2143_v14  ;;  %v2696_v19 = vld [vmem:[#allocation11 + $0x3a4] sm:$0xf]  ;;  %v2079_v12 = vld [vmem:[#allocation11 + $0x130] sm:$0xf0] }
  0xb8   :  { %v3154_v31 = vadd.f32 %v250_v24, %v182_v26  ;;  %v3158_v32 = vadd.f32 %v264_v30, %v183_v27  ;;  %v2682_v30 = vld [vmem:[#allocation11 + $0x32c] sm:$0xf0]  ;;  %v2648_v14 = vld [vmem:[#allocation11 + $0x224] sm:$0xf] }
  0xb9   :  { %v298_v33 = vadd.f32 %v297_v20, %v3148_v22  ;;  %v318_v34 = vmul.f32 %v3148_v22, %v3148_v22  ;;  %v319_v35 = vmul.f32 %v3150_v29, %v3150_v29  ;;  %v2205_v20 = vld [vmem:[#allocation11 + $0x220] sm:$0xf]  ;;  %1222 = vmatpush.bf16.msrb.mxu1 %v2078_v23 }
  0xba   :  { %v320_v38 = vmul.f32 %v3154_v31, %v3154_v31  ;;  %v321_v26 = vmul.f32 %v3158_v32, %v3158_v32  ;;  %v302_v39 = vadd.f32 %v3158_v32, %v3154_v31  ;;  %v2206_v24 = vor.u32 %v2650_v21, %v2205_v20  ;;  %v2399_v20 = vld [vmem:[#allocation11 + $0x3b0] sm:$0xf0] }
  0xbb   :  { %v299_v36 = vadd.f32 %v298_v33, %v3150_v29  ;;  %v325_v37 = vadd.f32 %v324_v28, %v318_v34  ;;  %v2333_v28 = vld [vmem:[#allocation11 + $0x320] sm:$0xf]  ;;  %v309_v33 = vsub.f32 1.0, %v3185_v13  ;;  %v2018_v13 = vor.u32 %v2600_v10, %v2015_v11  ;;  %v1951_v10 = vld [vmem:[#allocation11 + $0x30] sm:$0xf0] }
  0xbc   :  { %v329_v45 = vadd.f32 %v321_v26, %v320_v38  ;;  %v2334_v34 = vor.u32 %v2682_v30, %v2333_v28  ;;  %1236 = vmatpush.bf16.msrb.mxu2 %v2206_v24  ;;  %v2614_v26 = vld [vmem:[#allocation11 + $0x10c] sm:$0xf0]  ;;  %v2402_v21 = vor.u32 %v2696_v19, %v2399_v20  ;;  %v2596_v24 = vld [vmem:[#allocation11 + $0x84] sm:$0xf]  ;;  %v1999_v28 = vld [vmem:[#allocation11 + $0x90] sm:$0xf0] }
  0xbd   :  { %300 = vadd.xlane.f32.xlu0 %v299_v36  ;;  %v326_v25 = vadd.f32 %v325_v37, %v319_v35  ;;  %v1933_v35 = vld [vmem:[#allocation11] sm:$0xf]  ;;  %v2582_v36 = vld [vmem:[#allocation11 + $0xc] sm:$0xf0]  ;;  %v310_v8 = vmul.f32 %v3182_v63, %v309_v33  ;;  %v2628_v30 = vld [vmem:[#allocation11 + $0x184] sm:$0xf]  ;;  %v2002_v33 = vor.u32 %v2596_v24, %v1999_v28 }
  0xbe   :  { %v278_v27 = vpop.f32.mrf.mxu2  ;;  %v292_v41 = vpop.f32.mrf.mxu3  ;;  %v2061_v37 = vld [vmem:[#allocation11 + $0x100] sm:$0xf]  ;;  %1250 = vmatpush.bf16.msrb.mxu3 %v2334_v34  ;;  %v1934_v38 = vor.u32 %v2582_v36, %v1933_v35  ;;  %v2127_v34 = vld [vmem:[#allocation11 + $0x190] sm:$0xf0]  ;;  %v2660_v35 = vld [vmem:[#allocation11 + $0x284] sm:$0xf] }
  0xbf   :  { %v3172_v40 = vadd.f32 %v278_v27, %v184_v16  ;;  %327 = vadd.xlane.f32.xlu1 %v326_v25  ;;  %v3174_v42 = vadd.f32 %v292_v41, %v185_v18  ;;  %v2586_v16 = vld [vmem:[#allocation11 + $0x2c] sm:$0xf0]  ;;  %v2189_v25 = vld [vmem:[#allocation11 + $0x200] sm:$0xf]  ;;  %v311_v23 = vadd.f32 %v3182_v63, %v310_v8  ;;  %v2255_v36 = vld [vmem:[#allocation11 + $0x290] sm:$0xf0]  ;;  %v2354_v8 = vor.u32 %v2684_v2, %v2351_v4 }
  0xc0   :  { %v1950_v18 = vor.u32 %v2586_v16, %v1949_v15  ;;  %v2646_v27 = vld [vmem:[#allocation11 + $0x20c] sm:$0xf0]  ;;  %v2664_v15 = vld [vmem:[#allocation11 + $0x2a4] sm:$0xf]  ;;  %v2271_v16 = vld [vmem:[#allocation11 + $0x2b0] sm:$0xf0] }
  0xc1   :  { %v322_v43 = vmul.f32 %v3172_v40, %v3172_v40  ;;  %v303_v44 = vadd.f32 %v302_v39, %v3172_v40  ;;  %v323_v47 = vmul.f32 %v3174_v42, %v3174_v42  ;;  %v2062_v39 = vor.u32 %v2614_v26, %v2061_v37  ;;  %v2692_v26 = vld [vmem:[#allocation11 + $0x384] sm:$0xf]  ;;  %v1935_v20 = vld [vmem:[#allocation11 + $0x10] sm:$0xf0]  ;;  %v296_v2 = vld [vmem:[#allocation10] sm:$0xf] }
  0xc2   :  { %1208 = vmatpush.bf16.msrb.mxu0 %v1950_v18  ;;  %v2190_v41 = vor.u32 %v2646_v27, %v2189_v25  ;;  %v2274_v18 = vor.u32 %v2664_v15, %v2271_v16  ;;  %v2130_v37 = vor.u32 %v2628_v30, %v2127_v34  ;;  %v2383_v25 = vld [vmem:[#allocation11 + $0x390] sm:$0xf0]  ;;  %v2616_v11 = vld [vmem:[#allocation11 + $0x124] sm:$0xf] }
  0xc3   :  { %v304_v46 = vadd.f32 %v303_v44, %v3174_v42  ;;  %v330_v48 = vadd.f32 %v329_v45, %v322_v43  ;;  %v2317_v43 = vld [vmem:[#allocation11 + $0x300] sm:$0xf]  ;;  %v2678_v44 = vld [vmem:[#allocation11 + $0x30c] sm:$0xf0]  ;;  %v2608_v45 = vld [vmem:[#allocation11 + $0xe4] sm:$0xf]  ;;  %1223 = vmatpush.bf16.msrb.mxu1 %v2062_v39  ;;  %v2386_v27 = vor.u32 %v2692_v26, %v2383_v25  ;;  %v3192_v39 = vsel %vm312_vm1, %v3182_v63, %v311_v23 }
  0xc4   :  { %1237 = vmatpush.bf16.msrb.mxu2 %v2190_v41  ;;  %v2592_v41 = vld [vmem:[#allocation11 + $0x64] sm:$0xf]  ;;  %v2370_v63 = vor.u32 %v2688_v52, %v2367_v53  ;;  %v2207_v15 = vld [vmem:[#allocation11 + $0x230] sm:$0xf0]  ;;  %v2082_v24 = vor.u32 %v2616_v11, %v2079_v12  ;;  %v396_v12 = vperm.slane %v296_v2, 0 }
  0xc5   :  { %305 = vadd.xlane.f32.xlu0 %v304_v46  ;;  %v331_v49 = vadd.f32 %v330_v48, %v323_v47  ;;  %v2318_v46 = vor.u32 %v2678_v44, %v2317_v43  ;;  %v2047_v47 = vld [vmem:[#allocation11 + $0xf0] sm:$0xf0]  ;;  %v2640_v48 = vld [vmem:[#allocation11 + $0x1e4] sm:$0xf]  ;;  %v2210_v28 = vor.u32 %v2648_v14, %v2207_v15  ;;  %v398_v14 = vperm.slane %v296_v2, 2 }
  0xc6   :  { %1209 = vmatpush.bf16.msrb.mxu0 %v1934_v38  ;;  %v2050_v50 = vor.u32 %v2608_v45, %v2047_v47  ;;  %v2258_v38 = vor.u32 %v2660_v35, %v2255_v36  ;;  %v1983_v43 = vld [vmem:[#allocation11 + $0x70] sm:$0xf0]  ;;  %v2624_v44 = vld [vmem:[#allocation11 + $0x164] sm:$0xf]  ;;  %v399_v15 = vperm.slane %v296_v2, 3 }
  0xc7   :  { %332 = vadd.xlane.f32.xlu1 %v331_v49  ;;  %v2175_v49 = vld [vmem:[#allocation11 + $0x1f0] sm:$0xf0]  ;;  %1251 = vmatpush.bf16.msrb.mxu3 %v2318_v46  ;;  %v1986_v45 = vor.u32 %v2592_v41, %v1983_v43  ;;  %v2656_v47 = vld [vmem:[#allocation11 + $0x264] sm:$0xf] }
  0xc8   :  { %v2178_v51 = vor.u32 %v2640_v48, %v2175_v49  ;;  %1286 = vmatpush.bf16.msra.mxu2 %v2306_v55  ;;  %v2111_v46 = vld [vmem:[#allocation11 + $0x170] sm:$0xf0]  ;;  %v2680_v16 = vld [vmem:[#allocation11 + $0x324] sm:$0xf] }
  0xc9   :  { %v2239_v48 = vld [vmem:[#allocation11 + $0x270] sm:$0xf0]  ;;  %v2580_v19 = vld [vmem:[#allocation11 + $0x4] sm:$0xf] }
  0xca   :  { %1258 = vmatpush.bf16.msra.mxu0 %v2050_v50  ;;  %1272 = vmatpush.bf16.msra.mxu1 %v2178_v51  ;;  %v2114_v50 = vor.u32 %v2624_v44, %v2111_v46  ;;  %v2242_v51 = vor.u32 %v2656_v47, %v2239_v48  ;;  %v2612_v30 = vld [vmem:[#allocation11 + $0x104] sm:$0xf]  ;;  %v2319_v25 = vld [vmem:[#allocation11 + $0x310] sm:$0xf0] }
  0xcb   :  { %1300 = vmatpush.bf16.msra.mxu3 %v2434_v59  ;;  %v2095_v59 = vld [vmem:[#allocation11 + $0x150] sm:$0xf0]  ;;  %v2644_v36 = vld [vmem:[#allocation11 + $0x204] sm:$0xf] }
  0xcc   :  { %1287 = vmatpush.bf16.msra.mxu2 %v2290_v6  ;;  %v2098_v6 = vor.u32 %v2620_v58, %v2095_v59  ;;  %v2676_v26 = vld [vmem:[#allocation11 + $0x304] sm:$0xf] }
  0xcd   :  { %v2322_v46 = vor.u32 %v2676_v26, %v2319_v25 }
  0xce   :  { %1259 = vmatpush.bf16.msra.mxu0 %v2034_v60  ;;  %1273 = vmatpush.bf16.msra.mxu1 %v2162_v1  ;;  %v2652_v60 = vld [vmem:[#allocation11 + $0x244] sm:$0xf]  ;;  %v1970_v1 = vor.u32 %v2588_v56, %v1967_v57 }
  0xcf   :  { %1301 = vmatpush.bf16.msra.mxu3 %v2418_v7  ;;  %v2226_v7 = vor.u32 %v2652_v60, %v2223_v61 }
  0xd0   :  { %1288 = vmatpush.bf16.msra.mxu2 %v2274_v18  ;;  %v2335_v18 = vld [vmem:[#allocation11 + $0x330] sm:$0xf0] }
  0xd1   :  { %v2338_v35 = vor.u32 %v2680_v16, %v2335_v18 }
  0xd2   :  { %1260 = vmatpush.bf16.msra.mxu0 %v2018_v13  ;;  %1274 = vmatpush.bf16.msra.mxu1 %v2146_v17  ;;  %v1954_v17 = vor.u32 %v2584_v5, %v1951_v10 }
  0xd3   :  { %1302 = vmatpush.bf16.msra.mxu3 %v2402_v21 }
  0xd4   :  { %1289 = vmatpush.bf16.msra.mxu2 %v2258_v38 }
  0xd6   :  { %1261 = vmatpush.bf16.msra.mxu0 %v2002_v33  ;;  %1275 = vmatpush.bf16.msra.mxu1 %v2130_v37  ;;  %v2063_v33 = vld [vmem:[#allocation11 + $0x110] sm:$0xf0] }
  0xd7   :  { %1303 = vmatpush.bf16.msra.mxu3 %v2386_v27  ;;  %v2191_v37 = vld [vmem:[#allocation11 + $0x210] sm:$0xf0]  ;;  %v1938_v27 = vor.u32 %v2580_v19, %v1935_v20  ;;  %v2066_v41 = vor.u32 %v2612_v30, %v2063_v33 }
  0xd8   :  { %1290 = vmatpush.bf16.msra.mxu2 %v2242_v51 }
  0xda   :  { %1262 = vmatpush.bf16.msra.mxu0 %v1986_v45  ;;  %1276 = vmatpush.bf16.msra.mxu1 %v2114_v50  ;;  %v2194_v45 = vor.u32 %v2644_v36, %v2191_v37 }
  0xdb   :  { %1304 = vmatpush.bf16.msra.mxu3 %v2370_v63  ;;  %v295_v63 = vld [vmem:[#allocation8] sm:$0xf] }
  0xdc   :  { %1291 = vmatpush.bf16.msra.mxu2 %v2226_v7  ;;  %v379_v60 = vperm.slane %v295_v63, 0  ;;  %v380_v5 = vperm.slane %v295_v63, 1  ;;  %v382_v7 = vperm.slane %v295_v63, 3 }
  0xde   :  { %1263 = vmatpush.bf16.msra.mxu0 %v1970_v1  ;;  %1277 = vmatpush.bf16.msra.mxu1 %v2098_v6  ;;  %v381_v6 = vperm.slane %v295_v63, 2 }
  0xdf   :  { %1305 = vmatpush.bf16.msra.mxu3 %v2354_v8 }
  0xe0   :  { %1292 = vmatpush.bf16.msra.mxu2 %v2210_v28 }
  0xe2   :  { %1264 = vmatpush.bf16.msra.mxu0 %v1954_v17  ;;  %1278 = vmatpush.bf16.msra.mxu1 %v2082_v24 }
  0xe3   :  { %1306 = vmatpush.bf16.msra.mxu3 %v2338_v35 }
  0xe4   :  { %1293 = vmatpush.bf16.msra.mxu2 %v2194_v45  ;;  %v2643_v45 = vld [vmem:[#allocation11 + $0x1f4] sm:$0xf0] }
  0xe6   :  { %1265 = vmatpush.bf16.msra.mxu0 %v1938_v27  ;;  %1279 = vmatpush.bf16.msra.mxu1 %v2066_v41  ;;  %v2053_v27 = vld [vmem:[#allocation11 + $0xe8] sm:$0xf] }
  0xe7   :  { %1307 = vmatpush.bf16.msra.mxu3 %v2322_v46  ;;  %v2181_v41 = vld [vmem:[#allocation11 + $0x1e8] sm:$0xf] }
  0xe8   :  { %v2309_v46 = vld [vmem:[#allocation11 + $0x2e8] sm:$0xf] }
 0x130   :  { %v301_v49 = vpop.xlane.xlu0 %300 }
 0x131   :  { %v3195_v54 = vmul.f32 %v3192_v39, %v301_v49 }
 0x132   :  { %v328_v55 = vpop.xlane.xlu1 %327 }
 0x133   :  { %v334_v62 = vmul.f32 %v328_v55, %v3192_v39  ;;  %v336_v0 = vmul.f32 %v3195_v54, %v3195_v54  ;;  %v362_v58 = vsub.f32 %v3134_v3, %v3195_v54  ;;  %v363_v59 = vsub.f32 %v3138_v9, %v3195_v54 }
 0x134   :  { %v364_v61 = vsub.f32 %v3148_v22, %v3195_v54 }
 0x135   :  { %v338_v13 = vsub.f32 %v334_v62, %v336_v0  ;;  %v365_v62 = vsub.f32 %v3150_v29, %v3195_v54 }
 0x137   :  { %v340_v21 = vadd.f32 1e-05, %v338_v13  ;;  %v397_v13 = vperm.slane %v296_v2, 1  ;;  %v2607_v2 = vld [vmem:[#allocation11 + $0xd4] sm:$0xf0] }
 0x138   :  { %v306_v23 = vpop.xlane.xlu0 %305 }
 0x139   :  { %v3201_v34 = vmul.f32 %v3192_v39, %v306_v23  ;;  %2760 = vrsqrt.f32 %v340_v21  ;;  %vm348_vm3 = vweird.f32 %v340_v21 }
 0x13a   :  { %v333_v38 = vpop.xlane.xlu1 %332 }
 0x13b   :  { %v335_v43 = vmul.f32 %v333_v38, %v3192_v39  ;;  %v337_v44 = vmul.f32 %v3201_v34, %v3201_v34  ;;  %v366_v18 = vsub.f32 %v3154_v31, %v3201_v34  ;;  %v367_v19 = vsub.f32 %v3158_v32, %v3201_v34 }
 0x13c   :  { %v368_v20 = vsub.f32 %v3172_v40, %v3201_v34  ;;  %v2611_v40 = vld [vmem:[#allocation11 + $0xf4] sm:$0xf0] }
 0x13d   :  { %v339_v47 = vsub.f32 %v335_v43, %v337_v44 }
 0x13f   :  { %v2761_v48 = vpop.eup %2760  ;;  %v341_v49 = vadd.f32 1e-05, %v339_v47  ;;  %v2675_v47 = vld [vmem:[#allocation11 + $0x2f4] sm:$0xf0] }
 0x140   :  { %v343_v50 = vmul.f32 %v2761_v48, %v340_v21  ;;  %vm349_vm2 = vweird.f32 %v2761_v48  ;;  %v369_v21 = vsub.f32 %v3174_v42, %v3201_v34 }
 0x141   :  { %2762 = vrsqrt.f32 %v341_v49  ;;  %vm350_vm4 = vmor %vm348_vm3, %vm349_vm2  ;;  %vm358_vm6 = vweird.f32 %v341_v49 }
 0x142   :  { %v344_v51 = vmul.f32 %v2761_v48, %v343_v50 }
 0x144   :  { %v345_v52 = vmul.f32 0.5, %v344_v51 }
 0x146   :  { %v346_v53 = vsub.f32 1.5, %v345_v52  ;;  %v2437_v52 = vld [vmem:[#allocation11 + $0x3e8] sm:$0xf] }
 0x147   :  { %v2763_v55 = vpop.eup %2762 }
 0x148   :  { %v347_v56 = vmul.f32 %v2761_v48, %v346_v53  ;;  %v353_v57 = vmul.f32 %v2763_v55, %v341_v49  ;;  %vm359_vm5 = vweird.f32 %v2763_v55 }
 0x149   :  { %vm360_vm7 = vmor %vm358_vm6, %vm359_vm5 }
 0x14a   :  { %v351_v0 = vsel %vm350_vm4, %v2761_v48, %v347_v56  ;;  %v354_v1 = vmul.f32 %v2763_v55, %v353_v57  ;;  %v2707_v57 = vld [vmem:[#allocation11 + $0x3f4] sm:$0xf0] }
 0x14b   :  { %v370_v4 = vmul.f32 %v362_v58, %v351_v0  ;;  %v371_v3 = vmul.f32 %v363_v59, %v351_v0  ;;  %v372_v10 = vmul.f32 %v364_v61, %v351_v0  ;;  %v373_v11 = vmul.f32 %v365_v62, %v351_v0 }
 0x14c   :  { %v355_v8 = vmul.f32 0.5, %v354_v1  ;;  %v2054_v58 = vor.u32 %v2611_v40, %v2053_v27  ;;  %v2182_v59 = vor.u32 %v2643_v45, %v2181_v41  ;;  %v2037_v1 = vld [vmem:[#allocation11 + $0xc8] sm:$0xf]  ;;  %v2595_v27 = vld [vmem:[#allocation11 + $0x74] sm:$0xf0] }
 0x14d   :  { %v387_v22 = vmul.f32 %v379_v60, %v370_v4  ;;  %v388_v54 = vmul.f32 %v380_v5, %v371_v3  ;;  %v389_v16 = vmul.f32 %v381_v6, %v372_v10  ;;  %v390_v17 = vmul.f32 %v382_v7, %v373_v11  ;;  %v2671_v3 = vld [vmem:[#allocation11 + $0x2d4] sm:$0xf0]  ;;  %v2421_v10 = vld [vmem:[#allocation11 + $0x3c8] sm:$0xf] }
 0x14e   :  { %v356_v9 = vsub.f32 1.5, %v355_v8  ;;  %v2310_v4 = vor.u32 %v2675_v47, %v2309_v46  ;;  %v2293_v8 = vld [vmem:[#allocation11 + $0x2c8] sm:$0xf]  ;;  %v2703_v11 = vld [vmem:[#allocation11 + $0x3d4] sm:$0xf0] }
 0x14f   :  { %v404_v35 = vadd.f32 %v396_v12, %v387_v22  ;;  %v405_v36 = vadd.f32 %v397_v13, %v388_v54  ;;  %v406_v37 = vadd.f32 %v398_v14, %v389_v16  ;;  %v407_v31 = vadd.f32 %v399_v15, %v390_v17  ;;  %v2603_v22 = vld [vmem:[#allocation11 + $0xb4] sm:$0xf0]  ;;  %v2277_v16 = vld [vmem:[#allocation11 + $0x2a8] sm:$0xf] }
 0x150   :  { %v357_v29 = vmul.f32 %v2763_v55, %v356_v9  ;;  %v2038_v9 = vor.u32 %v2607_v2, %v2037_v1  ;;  %v2635_v54 = vld [vmem:[#allocation11 + $0x1b4] sm:$0xf0]  ;;  %v2373_v45 = vld [vmem:[#allocation11 + $0x368] sm:$0xf] }
 0x151   :  { %v412_v48 = vmax.f32 %v404_v35, 0.0  ;;  %v413_v49 = vmax.f32 %v405_v36, 0.0  ;;  %v414_v50 = vmax.f32 %v406_v37, 0.0  ;;  %v415_v51 = vmax.f32 %v407_v31, 0.0  ;;  %v2667_v17 = vld [vmem:[#allocation11 + $0x2b4] sm:$0xf0] }
 0x152   :  { %v361_v23 = vsel %vm360_vm7, %v2763_v55, %v357_v29  ;;  %v2149_v29 = vld [vmem:[#allocation11 + $0x1a8] sm:$0xf]  ;;  %v2631_v35 = vld [vmem:[#allocation11 + $0x194] sm:$0xf0] }
 0x153   :  { %v374_v24 = vmul.f32 %v366_v18, %v361_v23  ;;  %v375_v28 = vmul.f32 %v367_v19, %v361_v23  ;;  %v376_v30 = vmul.f32 %v368_v20, %v361_v23  ;;  %v377_v33 = vmul.f32 %v369_v21, %v361_v23  ;;  %v2405_v18 = vld [vmem:[#allocation11 + $0x3a8] sm:$0xf]  ;;  %v2699_v19 = vld [vmem:[#allocation11 + $0x3b4] sm:$0xf0] }
 0x154   :  { %v2150_v21 = vor.u32 %v2635_v54, %v2149_v29  ;;  %v2005_v23 = vld [vmem:[#allocation11 + $0x88] sm:$0xf]  ;;  %v2663_v37 = vld [vmem:[#allocation11 + $0x294] sm:$0xf0] }
 0x155   :  { %v391_v38 = vmul.f32 %v379_v60, %v374_v24  ;;  %v392_v26 = vmul.f32 %v380_v5, %v375_v28  ;;  %v393_v32 = vmul.f32 %v381_v6, %v376_v30  ;;  %v394_v25 = vmul.f32 %v382_v7, %v377_v33  ;;  %v2165_v6 = vld [vmem:[#allocation11 + $0x1c8] sm:$0xf]  ;;  %v2639_v7 = vld [vmem:[#allocation11 + $0x1d4] sm:$0xf0] }
 0x156   :  { %v2438_v5 = vor.u32 %v2707_v57, %v2437_v52  ;;  %v2599_v24 = vld [vmem:[#allocation11 + $0x94] sm:$0xf0]  ;;  %v2278_v28 = vor.u32 %v2667_v17, %v2277_v16  ;;  %v2406_v30 = vor.u32 %v2699_v19, %v2405_v18  ;;  %v2133_v33 = vld [vmem:[#allocation11 + $0x188] sm:$0xf] }
 0x157   :  { %v408_v43 = vadd.f32 %v396_v12, %v391_v38  ;;  %v409_v42 = vadd.f32 %v397_v13, %v392_v26  ;;  %v410_v34 = vadd.f32 %v398_v14, %v393_v32  ;;  %v411_v44 = vadd.f32 %v399_v15, %v394_v25  ;;  %v2021_v13 = vld [vmem:[#allocation11 + $0xa8] sm:$0xf]  ;;  %v2695_v38 = vld [vmem:[#allocation11 + $0x394] sm:$0xf0] }
 0x158   :  { %v2166_v12 = vor.u32 %v2639_v7, %v2165_v6  ;;  %v2294_v14 = vor.u32 %v2671_v3, %v2293_v8  ;;  %v2422_v15 = vor.u32 %v2703_v11, %v2421_v10  ;;  %v2022_v20 = vor.u32 %v2603_v22, %v2021_v13  ;;  %v2261_v36 = vld [vmem:[#allocation11 + $0x288] sm:$0xf]  ;;  %v2691_v46 = vld [vmem:[#allocation11 + $0x374] sm:$0xf0] }
 0x159   :  { %v416_v53 = vmax.f32 %v408_v43, 0.0  ;;  %v417_v63 = vmax.f32 %v409_v42, 0.0  ;;  %v418_v55 = vmax.f32 %v410_v34, 0.0  ;;  %v419_v56 = vmax.f32 %v411_v44, 0.0  ;;  %v2389_v31 = vld [vmem:[#allocation11 + $0x388] sm:$0xf] }
 0x15a   :  { %v2006_v26 = vor.u32 %v2599_v24, %v2005_v23  ;;  %v2134_v32 = vor.u32 %v2631_v35, %v2133_v33  ;;  %v1989_v25 = vld [vmem:[#allocation11 + $0x68] sm:$0xf]  ;;  %v2262_v40 = vor.u32 %v2663_v37, %v2261_v36  ;;  %v2390_v41 = vor.u32 %v2695_v38, %v2389_v31  ;;  %v2627_v42 = vld [vmem:[#allocation11 + $0x174] sm:$0xf0]  ;;  %v2055_v23 = vld [vmem:[#allocation11 + $0xf8] sm:$0xf0] }
 0x15b   :  { %v3223_v60 = vpack.c.bf16 %v416_v53, %v412_v48  ;;  %v3225_v61 = vpack.c.bf16 %v417_v63, %v413_v49  ;;  %v3227_v62 = vpack.c.bf16 %v418_v55, %v414_v50  ;;  %v3229_v0 = vpack.c.bf16 %v419_v56, %v415_v51  ;;  %v2117_v43 = vld [vmem:[#allocation11 + $0x168] sm:$0xf]  ;;  %v2659_v44 = vld [vmem:[#allocation11 + $0x274] sm:$0xf0]  ;;  %v2641_v24 = vld [vmem:[#allocation11 + $0x1ec] sm:$0xf] }
 0x15c   :  { %v2245_v34 = vld [vmem:[#allocation11 + $0x268] sm:$0xf]  ;;  %v1990_v47 = vor.u32 %v2595_v27, %v1989_v25  ;;  %v2118_v48 = vor.u32 %v2627_v42, %v2117_v43  ;;  %v2591_v50 = vld [vmem:[#allocation11 + $0x54] sm:$0xf0]  ;;  %v2374_v52 = vor.u32 %v2691_v46, %v2373_v45  ;;  %v2311_v36 = vld [vmem:[#allocation11 + $0x2f8] sm:$0xf0] }
 0x15d   :  { %1210 = vmatmul.bf16.vlgmr.msrb.gmra.mxu0 %v3223_v60  ;;  %1224 = vmatmul.bf16.vlgmr.msrb.gmra.mxu1 %v3225_v61  ;;  %v1973_v49 = vld [vmem:[#allocation11 + $0x48] sm:$0xf]  ;;  %v2246_v51 = vor.u32 %v2659_v44, %v2245_v34  ;;  %v2623_v63 = vld [vmem:[#allocation11 + $0x154] sm:$0xf0]  ;;  %v2705_v37 = vld [vmem:[#allocation11 + $0x3ec] sm:$0xf] }
 0x15e   :  { %1238 = vmatmul.bf16.vlgmr.msrb.gmra.mxu2 %v3227_v62  ;;  %1252 = vmatmul.bf16.vlgmr.msrb.gmra.mxu3 %v3229_v0  ;;  %v2101_v53 = vld [vmem:[#allocation11 + $0x148] sm:$0xf]  ;;  %v2655_v56 = vld [vmem:[#allocation11 + $0x254] sm:$0xf0]  ;;  %v2439_v31 = vld [vmem:[#allocation11 + $0x3f8] sm:$0xf0] }
 0x15f   :  { %1314 = vmatpush.bf16.msrb.mxu0 %v2054_v58  ;;  %1328 = vmatpush.bf16.msrb.mxu1 %v2182_v59  ;;  %v2229_v55 = vld [vmem:[#allocation11 + $0x248] sm:$0xf]  ;;  %v2687_v58 = vld [vmem:[#allocation11 + $0x354] sm:$0xf0]  ;;  %v1974_v59 = vor.u32 %v2591_v50, %v1973_v49  ;;  %v2102_v1 = vor.u32 %v2623_v63, %v2101_v53  ;;  %v2605_v27 = vld [vmem:[#allocation11 + $0xcc] sm:$0xf]  ;;  %v2442_v43 = vor.u32 %v2705_v37, %v2439_v31 }
 0x160   :  { %1342 = vmatpush.bf16.msrb.mxu2 %v2310_v4  ;;  %1356 = vmatpush.bf16.msrb.mxu3 %v2438_v5  ;;  %v2357_v57 = vld [vmem:[#allocation11 + $0x348] sm:$0xf]  ;;  %v2587_v4 = vld [vmem:[#allocation11 + $0x34] sm:$0xf0]  ;;  %v2230_v5 = vor.u32 %v2655_v56, %v2229_v55  ;;  %v2637_v42 = vld [vmem:[#allocation11 + $0x1cc] sm:$0xf] }
 0x161   :  { %v1957_v2 = vld [vmem:[#allocation11 + $0x28] sm:$0xf]  ;;  %v2358_v6 = vor.u32 %v2687_v58, %v2357_v57  ;;  %v2619_v8 = vld [vmem:[#allocation11 + $0x134] sm:$0xf0]  ;;  %v2167_v34 = vld [vmem:[#allocation11 + $0x1d8] sm:$0xf0] }
 0x162   :  { %v2085_v7 = vld [vmem:[#allocation11 + $0x128] sm:$0xf]  ;;  %v2651_v10 = vld [vmem:[#allocation11 + $0x234] sm:$0xf0]  ;;  %v1958_v13 = vor.u32 %v2587_v4, %v1957_v2  ;;  %v2669_v44 = vld [vmem:[#allocation11 + $0x2cc] sm:$0xf]  ;;  %v2170_v49 = vor.u32 %v2637_v42, %v2167_v34 }
 0x163   :  { %1315 = vmatpush.bf16.msrb.mxu0 %v2038_v9  ;;  %1329 = vmatpush.bf16.msrb.mxu1 %v2166_v12  ;;  %v2213_v3 = vld [vmem:[#allocation11 + $0x228] sm:$0xf]  ;;  %v2683_v9 = vld [vmem:[#allocation11 + $0x334] sm:$0xf0]  ;;  %v2086_v22 = vor.u32 %v2619_v8, %v2085_v7  ;;  %v2295_v45 = vld [vmem:[#allocation11 + $0x2d8] sm:$0xf0] }
 0x164   :  { %1343 = vmatpush.bf16.msrb.mxu2 %v2294_v14  ;;  %1357 = vmatpush.bf16.msrb.mxu3 %v2422_v15  ;;  %v2341_v11 = vld [vmem:[#allocation11 + $0x328] sm:$0xf]  ;;  %v2583_v14 = vld [vmem:[#allocation11 + $0x14] sm:$0xf0]  ;;  %v2214_v54 = vor.u32 %v2651_v10, %v2213_v3  ;;  %v2701_v46 = vld [vmem:[#allocation11 + $0x3cc] sm:$0xf] }
 0x165   :  { %v1941_v12 = vld [vmem:[#allocation11 + $0x8] sm:$0xf]  ;;  %v2615_v29 = vld [vmem:[#allocation11 + $0x114] sm:$0xf0]  ;;  %v2342_v16 = vor.u32 %v2683_v9, %v2341_v11  ;;  %v2601_v50 = vld [vmem:[#allocation11 + $0xac] sm:$0xf] }
 0x166   :  { %v2069_v15 = vld [vmem:[#allocation11 + $0x108] sm:$0xf]  ;;  %v2647_v18 = vld [vmem:[#allocation11 + $0x214] sm:$0xf0]  ;;  %v1942_v33 = vor.u32 %v2583_v14, %v1941_v12  ;;  %v2633_v63 = vld [vmem:[#allocation11 + $0x1ac] sm:$0xf] }
 0x167   :  { %1316 = vmatpush.bf16.msrb.mxu0 %v2022_v20  ;;  %1330 = vmatpush.bf16.msrb.mxu1 %v2150_v21  ;;  %v2197_v17 = vld [vmem:[#allocation11 + $0x208] sm:$0xf]  ;;  %v2679_v20 = vld [vmem:[#allocation11 + $0x314] sm:$0xf0]  ;;  %v2609_v21 = vld [vmem:[#allocation11 + $0xec] sm:$0xf]  ;;  %v2070_v35 = vor.u32 %v2615_v29, %v2069_v15 }
 0x168   :  { %1344 = vmatpush.bf16.msrb.mxu2 %v2278_v28  ;;  %1358 = vmatpush.bf16.msrb.mxu3 %v2406_v30  ;;  %v2325_v19 = vld [vmem:[#allocation11 + $0x308] sm:$0xf]  ;;  %v2183_v28 = vld [vmem:[#allocation11 + $0x1f8] sm:$0xf0]  ;;  %v2673_v30 = vld [vmem:[#allocation11 + $0x2ec] sm:$0xf]  ;;  %v2198_v38 = vor.u32 %v2647_v18, %v2197_v17 }
 0x169   :  { %v2186_v25 = vor.u32 %v2641_v24, %v2183_v28  ;;  %v2151_v55 = vld [vmem:[#allocation11 + $0x1b8] sm:$0xf0]  ;;  %v2665_v56 = vld [vmem:[#allocation11 + $0x2ac] sm:$0xf] }
 0x16a   :  { %v2279_v57 = vld [vmem:[#allocation11 + $0x2b8] sm:$0xf0]  ;;  %v2697_v58 = vld [vmem:[#allocation11 + $0x3ac] sm:$0xf]  ;;  %v2154_v2 = vor.u32 %v2633_v63, %v2151_v55 }
 0x16b   :  { %1317 = vmatpush.bf16.msrb.mxu0 %v2006_v26  ;;  %1331 = vmatpush.bf16.msrb.mxu1 %v2134_v32  ;;  %v2326_v26 = vor.u32 %v2679_v20, %v2325_v19  ;;  %v2058_v32 = vor.u32 %v2609_v21, %v2055_v23  ;;  %v2597_v4 = vld [vmem:[#allocation11 + $0x8c] sm:$0xf]  ;;  %v2135_v3 = vld [vmem:[#allocation11 + $0x198] sm:$0xf0] }
 0x16c   :  { %1345 = vmatpush.bf16.msrb.mxu2 %v2262_v40  ;;  %1359 = vmatpush.bf16.msrb.mxu3 %v2390_v41  ;;  %v2039_v40 = vld [vmem:[#allocation11 + $0xd8] sm:$0xf0]  ;;  %v2314_v41 = vor.u32 %v2673_v30, %v2311_v36  ;;  %v2629_v8 = vld [vmem:[#allocation11 + $0x18c] sm:$0xf] }
 0x16d   :  { %1266 = vmatmul.bf16.vlgmr.msra.gmra.mxu0 %v3223_v60  ;;  %1280 = vmatmul.bf16.vlgmr.msra.gmra.mxu1 %v3225_v61  ;;  %v2661_v10 = vld [vmem:[#allocation11 + $0x28c] sm:$0xf]  ;;  %v2263_v11 = vld [vmem:[#allocation11 + $0x298] sm:$0xf0] }
 0x16e   :  { %1294 = vmatmul.bf16.vlgmr.msra.gmra.mxu2 %v3227_v62  ;;  %1308 = vmatmul.bf16.vlgmr.msra.gmra.mxu3 %v3229_v0  ;;  %v2693_v9 = vld [vmem:[#allocation11 + $0x38c] sm:$0xf]  ;;  %v2391_v12 = vld [vmem:[#allocation11 + $0x398] sm:$0xf0]  ;;  %v2266_v29 = vor.u32 %v2661_v10, %v2263_v11 }
 0x16f   :  { %1318 = vmatpush.bf16.msrb.mxu0 %v1990_v47  ;;  %1332 = vmatpush.bf16.msrb.mxu1 %v2118_v48  ;;  %v2423_v47 = vld [vmem:[#allocation11 + $0x3d8] sm:$0xf0]  ;;  %v2042_v48 = vor.u32 %v2605_v27, %v2039_v40  ;;  %v2593_v14 = vld [vmem:[#allocation11 + $0x6c] sm:$0xf] }
 0x170   :  { %1346 = vmatpush.bf16.msrb.mxu2 %v2246_v51  ;;  %1360 = vmatpush.bf16.msrb.mxu3 %v2374_v52  ;;  %v2023_v51 = vld [vmem:[#allocation11 + $0xb8] sm:$0xf0]  ;;  %v2298_v52 = vor.u32 %v2669_v44, %v2295_v45  ;;  %v2426_v53 = vor.u32 %v2701_v46, %v2423_v47  ;;  %v2657_v18 = vld [vmem:[#allocation11 + $0x26c] sm:$0xf] }
 0x171   :  { %v1991_v15 = vld [vmem:[#allocation11 + $0x78] sm:$0xf0]  ;;  %v2689_v20 = vld [vmem:[#allocation11 + $0x36c] sm:$0xf] }
 0x172   :  { %v2119_v17 = vld [vmem:[#allocation11 + $0x178] sm:$0xf0]  ;;  %v1994_v23 = vor.u32 %v2593_v14, %v1991_v15  ;;  %v2589_v28 = vld [vmem:[#allocation11 + $0x4c] sm:$0xf] }
 0x173   :  { %1319 = vmatpush.bf16.msrb.mxu0 %v1974_v59  ;;  %1333 = vmatpush.bf16.msrb.mxu1 %v2102_v1  ;;  %v2407_v59 = vld [vmem:[#allocation11 + $0x3b8] sm:$0xf0]  ;;  %v2026_v1 = vor.u32 %v2601_v50, %v2023_v51  ;;  %v2621_v36 = vld [vmem:[#allocation11 + $0x14c] sm:$0xf] }
 0x174   :  { %1347 = vmatpush.bf16.msrb.mxu2 %v2230_v5  ;;  %1361 = vmatpush.bf16.msrb.mxu3 %v2358_v6  ;;  %v2007_v5 = vld [vmem:[#allocation11 + $0x98] sm:$0xf0]  ;;  %v2282_v6 = vor.u32 %v2665_v56, %v2279_v57  ;;  %v2410_v7 = vor.u32 %v2697_v58, %v2407_v59  ;;  %v2653_v31 = vld [vmem:[#allocation11 + $0x24c] sm:$0xf] }
 0x175   :  { %v2247_v19 = vld [vmem:[#allocation11 + $0x278] sm:$0xf0]  ;;  %v2585_v40 = vld [vmem:[#allocation11 + $0x2c] sm:$0xf] }
 0x176   :  { %v2375_v21 = vld [vmem:[#allocation11 + $0x378] sm:$0xf0]  ;;  %v2617_v34 = vld [vmem:[#allocation11 + $0x12c] sm:$0xf] }
 0x177   :  { %1320 = vmatpush.bf16.msrb.mxu0 %v1958_v13  ;;  %1334 = vmatpush.bf16.msrb.mxu1 %v2086_v22  ;;  %v2010_v13 = vor.u32 %v2597_v4, %v2007_v5  ;;  %v2138_v22 = vor.u32 %v2629_v8, %v2135_v3  ;;  %v1975_v30 = vld [vmem:[#allocation11 + $0x58] sm:$0xf0]  ;;  %v2649_v45 = vld [vmem:[#allocation11 + $0x22c] sm:$0xf] }
 0x178   :  { %1348 = vmatpush.bf16.msrb.mxu2 %v2214_v54  ;;  %1362 = vmatpush.bf16.msrb.mxu3 %v2342_v16  ;;  %v2394_v54 = vor.u32 %v2693_v9, %v2391_v12  ;;  %v2625_v16 = vld [vmem:[#allocation11 + $0x16c] sm:$0xf]  ;;  %v2103_v37 = vld [vmem:[#allocation11 + $0x158] sm:$0xf0] }
 0x179   :  { %v2122_v24 = vor.u32 %v2625_v16, %v2119_v17  ;;  %v2106_v27 = vor.u32 %v2621_v36, %v2103_v37  ;;  %v2087_v44 = vld [vmem:[#allocation11 + $0x138] sm:$0xf0]  ;;  %v2681_v47 = vld [vmem:[#allocation11 + $0x32c] sm:$0xf] }
 0x17a   :  { %v2215_v46 = vld [vmem:[#allocation11 + $0x238] sm:$0xf0]  ;;  %v2090_v50 = vor.u32 %v2617_v34, %v2087_v44  ;;  %v2581_v51 = vld [vmem:[#allocation11 + $0xc] sm:$0xf] }
 0x17b   :  { %1321 = vmatpush.bf16.msrb.mxu0 %v1942_v33  ;;  %1335 = vmatpush.bf16.msrb.mxu1 %v2070_v35  ;;  %v2250_v33 = vor.u32 %v2657_v18, %v2247_v19  ;;  %v2378_v35 = vor.u32 %v2689_v20, %v2375_v21  ;;  %v2613_v55 = vld [vmem:[#allocation11 + $0x10c] sm:$0xf]  ;;  %v2071_v56 = vld [vmem:[#allocation11 + $0x118] sm:$0xf0] }
 0x17c   :  { %1349 = vmatpush.bf16.msrb.mxu2 %v2198_v38  ;;  %1363 = vmatpush.bf16.msrb.mxu3 %v2326_v26  ;;  %v2231_v38 = vld [vmem:[#allocation11 + $0x258] sm:$0xf0]  ;;  %v2685_v26 = vld [vmem:[#allocation11 + $0x34c] sm:$0xf]  ;;  %v2074_v4 = vor.u32 %v2613_v55, %v2071_v56 }
 0x17d   :  { %v2645_v57 = vld [vmem:[#allocation11 + $0x20c] sm:$0xf]  ;;  %v2199_v58 = vld [vmem:[#allocation11 + $0x218] sm:$0xf0] }
 0x17e   :  { %1322 = vmatmul.bf16.vlgmr.msrb.gmra.mxu0 %v3223_v60  ;;  %1336 = vmatmul.bf16.vlgmr.msrb.gmra.mxu1 %v3225_v61  ;;  %v2677_v59 = vld [vmem:[#allocation11 + $0x30c] sm:$0xf]  ;;  %v2202_v5 = vor.u32 %v2645_v57, %v2199_v58 }
 0x17f   :  { %1370 = vmatpush.bf16.msra.mxu0 %v2058_v32  ;;  %1384 = vmatpush.bf16.msra.mxu1 %v2186_v25  ;;  %v2359_v32 = vld [vmem:[#allocation11 + $0x358] sm:$0xf0]  ;;  %v1978_v25 = vor.u32 %v2589_v28, %v1975_v30 }
 0x180   :  { %1398 = vmatpush.bf16.msra.mxu2 %v2314_v41  ;;  %1412 = vmatpush.bf16.msra.mxu3 %v2442_v43  ;;  %v1959_v41 = vld [vmem:[#allocation11 + $0x38] sm:$0xf0]  ;;  %v2234_v43 = vor.u32 %v2653_v31, %v2231_v38  ;;  %v2362_v42 = vor.u32 %v2685_v26, %v2359_v32 }
 0x181   :  { %1350 = vmatmul.bf16.vlgmr.msrb.gmra.mxu2 %v3227_v62  ;;  %1364 = vmatmul.bf16.vlgmr.msrb.gmra.mxu3 %v3229_v0 }
 0x183   :  { %1371 = vmatpush.bf16.msra.mxu0 %v2042_v48  ;;  %1385 = vmatpush.bf16.msra.mxu1 %v2170_v49  ;;  %v2343_v48 = vld [vmem:[#allocation11 + $0x338] sm:$0xf0]  ;;  %v1962_v49 = vor.u32 %v2585_v40, %v1959_v41 }
 0x184   :  { %1399 = vmatpush.bf16.msra.mxu2 %v2298_v52  ;;  %1413 = vmatpush.bf16.msra.mxu3 %v2426_v53  ;;  %v1943_v52 = vld [vmem:[#allocation11 + $0x18] sm:$0xf0]  ;;  %v2218_v53 = vor.u32 %v2649_v45, %v2215_v46  ;;  %v2346_v63 = vor.u32 %v2681_v47, %v2343_v48 }
 0x187   :  { %1372 = vmatpush.bf16.msra.mxu0 %v2026_v1  ;;  %1386 = vmatpush.bf16.msra.mxu1 %v2154_v2  ;;  %v2327_v1 = vld [vmem:[#allocation11 + $0x318] sm:$0xf0]  ;;  %v1946_v2 = vor.u32 %v2581_v51, %v1943_v52 }
 0x188   :  { %1400 = vmatpush.bf16.msra.mxu2 %v2282_v6  ;;  %1414 = vmatpush.bf16.msra.mxu3 %v2410_v7  ;;  %v2330_v6 = vor.u32 %v2677_v59, %v2327_v1 }
 0x18b   :  { %1373 = vmatpush.bf16.msra.mxu0 %v2010_v13  ;;  %1387 = vmatpush.bf16.msra.mxu1 %v2138_v22 }
 0x18c   :  { %1401 = vmatpush.bf16.msra.mxu2 %v2266_v29  ;;  %1415 = vmatpush.bf16.msra.mxu3 %v2394_v54 }
 0x18f   :  { %1374 = vmatpush.bf16.msra.mxu0 %v1994_v23  ;;  %1388 = vmatpush.bf16.msra.mxu1 %v2122_v24 }
 0x190   :  { %1402 = vmatpush.bf16.msra.mxu2 %v2250_v33  ;;  %1416 = vmatpush.bf16.msra.mxu3 %v2378_v35 }
 0x193   :  { %1375 = vmatpush.bf16.msra.mxu0 %v1978_v25  ;;  %1389 = vmatpush.bf16.msra.mxu1 %v2106_v27 }
 0x194   :  { %1403 = vmatpush.bf16.msra.mxu2 %v2234_v43  ;;  %1417 = vmatpush.bf16.msra.mxu3 %v2362_v42 }
 0x197   :  { %1376 = vmatpush.bf16.msra.mxu0 %v1962_v49  ;;  %1390 = vmatpush.bf16.msra.mxu1 %v2090_v50 }
 0x198   :  { %1404 = vmatpush.bf16.msra.mxu2 %v2218_v53  ;;  %1418 = vmatpush.bf16.msra.mxu3 %v2346_v63 }
 0x19b   :  { %1377 = vmatpush.bf16.msra.mxu0 %v1946_v2  ;;  %1391 = vmatpush.bf16.msra.mxu1 %v2074_v4 }
 0x19c   :  { %1405 = vmatpush.bf16.msra.mxu2 %v2202_v5  ;;  %1419 = vmatpush.bf16.msra.mxu3 %v2330_v6 }
 0x19e   :  { %1378 = vmatmul.bf16.vlgmr.msra.gmra.mxu0 %v3223_v60  ;;  %1392 = vmatmul.bf16.vlgmr.msra.gmra.mxu1 %v3225_v61 }
 0x19f   :  { %1406 = vmatmul.bf16.vlgmr.msra.gmra.mxu2 %v3227_v62  ;;  %1420 = vmatmul.bf16.vlgmr.msra.gmra.mxu3 %v3229_v0  ;;  %v552_v0 = vld [vmem:[%s3331_s6] sm:$0xf] }
 0x1a0   :  { %v555_v18 = vperm.slane %v552_v0, 1  ;;  %v554_v19 = vperm.slane %v552_v0, 0  ;;  %v556_v23 = vperm.slane %v552_v0, 2  ;;  %v557_v26 = vperm.slane %v552_v0, 3 }
 0x1da   :  { %v1211_v7 = vpop.f32.mrf.mxu0  ;;  %v1225_v8 = vpop.f32.mrf.mxu1 }
 0x1db   :  { %v1212_v30 = vadd.f32 %v1211_v7, %v554_v19 }
 0x1dd   :  { %v1226_v37 = vadd.f32 %v1225_v8, %v1212_v30  ;;  %v2715_v30 = vld [vmem:[#allocation16 + $0x38] sm:$0xff] }
 0x1de   :  { %1808 = vmatpush.bf16.msrb.mxu0 %v2715_v30 }
 0x1e1   :  { %v1239_v3 = vpop.f32.mrf.mxu2  ;;  %v1253_v10 = vpop.f32.mrf.mxu3 }
 0x1e2   :  { %v1213_v11 = vpop.f32.mrf.mxu0  ;;  %v1227_v9 = vpop.f32.mrf.mxu1  ;;  %v1240_v32 = vadd.f32 %v1239_v3, %v1226_v37  ;;  %v2714_v37 = vld [vmem:[#allocation16 + $0x30] sm:$0xff] }
 0x1e3   :  { %v1214_v42 = vadd.f32 %v1213_v11, %v554_v19  ;;  %1809 = vmatpush.bf16.msrb.mxu0 %v2714_v37 }
 0x1e4   :  { %v3252_v46 = vadd.f32 %v1253_v10, %v1240_v32  ;;  %v2713_v32 = vld [vmem:[#allocation16 + $0x28] sm:$0xff] }
 0x1e5   :  { %v1228_v50 = vadd.f32 %v1227_v9, %v1214_v42  ;;  %v2728_v42 = vld [vmem:[#allocation16 + $0xa0] sm:$0xff] }
 0x1e6   :  { %v1440_v55 = vmul.f32 %v3252_v46, %v3252_v46 }
 0x1e7   :  { %1810 = vmatpush.bf16.msrb.mxu0 %v2713_v32 }
 0x1e9   :  { %v1241_v12 = vpop.f32.mrf.mxu2  ;;  %v1255_v13 = vpop.f32.mrf.mxu3 }
 0x1ea   :  { %v1267_v22 = vpop.f32.mrf.mxu0  ;;  %v1281_v14 = vpop.f32.mrf.mxu1  ;;  %v1242_v56 = vadd.f32 %v1241_v12, %v1228_v50  ;;  %v2735_v50 = vld [vmem:[#allocation16 + $0xd8] sm:$0xff] }
 0x1eb   :  { %v1268_v24 = vadd.f32 %v1267_v22, %v555_v18 }
 0x1ec   :  { %v3269_v11 = vadd.f32 %v1255_v13, %v1242_v56 }
 0x1ed   :  { %v1282_v35 = vadd.f32 %v1281_v14, %v1268_v24 }
 0x1ee   :  { %v1444_v13 = vmul.f32 %v3269_v11, %v3269_v11 }
 0x1f1   :  { %v1295_v15 = vpop.f32.mrf.mxu2  ;;  %v1309_v29 = vpop.f32.mrf.mxu3 }
 0x1f2   :  { %v1269_v54 = vpop.f32.mrf.mxu0  ;;  %v1283_v60 = vpop.f32.mrf.mxu1  ;;  %v1296_v31 = vadd.f32 %v1295_v15, %v1282_v35  ;;  %v2731_v35 = vld [vmem:[#allocation16 + $0xb8] sm:$0xff] }
 0x1f3   :  { %v1270_v40 = vadd.f32 %v1269_v54, %v555_v18  ;;  %1836 = vmatpush.bf16.msrb.mxu2 %v2731_v35 }
 0x1f4   :  { %v3250_v34 = vadd.f32 %v1309_v29, %v1296_v31  ;;  %v2722_v31 = vld [vmem:[#allocation16 + $0x70] sm:$0xff] }
 0x1f5   :  { %v1284_v48 = vadd.f32 %v1283_v60, %v1270_v40  ;;  %v2737_v40 = vld [vmem:[#allocation16 + $0xe8] sm:$0xff] }
 0x1f6   :  { %v1441_v51 = vmul.f32 %v3250_v34, %v3250_v34  ;;  %v1428_v5 = vadd.f32 %v3250_v34, %v3252_v46 }
 0x1f8   :  { %v1448_v6 = vadd.f32 %v1441_v51, %v1440_v55  ;;  %v2726_v55 = vld [vmem:[#allocation16 + $0x90] sm:$0xff] }
 0x1f9   :  { %v1297_v16 = vpop.f32.mrf.mxu2  ;;  %v1311_v61 = vpop.f32.mrf.mxu3 }
 0x1fa   :  { %v1298_v52 = vadd.f32 %v1297_v16, %v1284_v48  ;;  %v2727_v48 = vld [vmem:[#allocation16 + $0x98] sm:$0xff] }
 0x1fb   :  { %v1323_v17 = vpop.f32.mrf.mxu0  ;;  %v1337_v62 = vpop.f32.mrf.mxu1 }
 0x1fc   :  { %v1324_v33 = vadd.f32 %v1323_v17, %v556_v23  ;;  %v3264_v7 = vadd.f32 %v1311_v61, %v1298_v52 }
 0x1fe   :  { %v1338_v38 = vadd.f32 %v1337_v62, %v1324_v33  ;;  %v1445_v29 = vmul.f32 %v3264_v7, %v3264_v7  ;;  %v1433_v61 = vadd.f32 %v3264_v7, %v3269_v11  ;;  %v2723_v33 = vld [vmem:[#allocation16 + $0x78] sm:$0xff] }
 0x1ff   :  { %1822 = vmatpush.bf16.msrb.mxu1 %v2723_v33 }
 0x203   :  { %v1325_v28 = vpop.f32.mrf.mxu0  ;;  %v1339_v36 = vpop.f32.mrf.mxu1  ;;  %1823 = vmatpush.bf16.msrb.mxu1 %v2722_v31 }
 0x204   :  { %v1351_v20 = vpop.f32.mrf.mxu2  ;;  %v1365_v21 = vpop.f32.mrf.mxu3  ;;  %v1326_v44 = vadd.f32 %v1325_v28, %v556_v23 }
 0x205   :  { %v1352_v41 = vadd.f32 %v1351_v20, %v1338_v38  ;;  %v1453_v20 = vadd.f32 %v1445_v29, %v1444_v13  ;;  %v2730_v38 = vld [vmem:[#allocation16 + $0xb0] sm:$0xff]  ;;  %v2732_v29 = vld [vmem:[#allocation16 + $0xc0] sm:$0xff] }
 0x206   :  { %v1340_v53 = vadd.f32 %v1339_v36, %v1326_v44  ;;  %v2739_v36 = vld [vmem:[#allocation16 + $0xf8] sm:$0xff]  ;;  %1837 = vmatpush.bf16.msrb.mxu2 %v2730_v38  ;;  %v2736_v44 = vld [vmem:[#allocation16 + $0xe0] sm:$0xff] }
 0x207   :  { %v3254_v49 = vadd.f32 %v1365_v21, %v1352_v41  ;;  %1850 = vmatpush.bf16.msrb.mxu3 %v2739_v36  ;;  %v2712_v41 = vld [vmem:[#allocation16 + $0x20] sm:$0xff]  ;;  %v1427_v38 = vld [vmem:[#allocation14] sm:$0xf] }
 0x208   :  { %1811 = vmatpush.bf16.msrb.mxu0 %v2712_v41 }
 0x209   :  { %v1442_v59 = vmul.f32 %v3254_v49, %v3254_v49  ;;  %v1429_v10 = vadd.f32 %v1428_v5, %v3254_v49  ;;  %v2733_v5 = vld [vmem:[#allocation16 + $0xc8] sm:$0xff] }
 0x20b   :  { %v1449_v14 = vadd.f32 %v1448_v6, %v1442_v59 }
 0x20c   :  { %v1353_v25 = vpop.f32.mrf.mxu2  ;;  %v1367_v27 = vpop.f32.mrf.mxu3 }
 0x20d   :  { %v1354_v1 = vadd.f32 %v1353_v25, %v1340_v53  ;;  %v2721_v25 = vld [vmem:[#allocation16 + $0x68] sm:$0xff]  ;;  %v2710_v53 = vld [vmem:[#allocation16 + $0x10] sm:$0xff] }
 0x20e   :  { %1824 = vmatpush.bf16.msrb.mxu1 %v2721_v25 }
 0x20f   :  { %v3271_v9 = vadd.f32 %v1367_v27, %v1354_v1  ;;  %v2729_v27 = vld [vmem:[#allocation16 + $0xa8] sm:$0xff] }
 0x210   :  { %1838 = vmatpush.bf16.msrb.mxu2 %v2729_v27 }
 0x211   :  { %v1446_v17 = vmul.f32 %v3271_v9, %v3271_v9  ;;  %v1434_v19 = vadd.f32 %v1433_v61, %v3271_v9 }
 0x213   :  { %v1454_v24 = vadd.f32 %v1453_v20, %v1446_v17 }
 0x214   :  { %1839 = vmatpush.bf16.msrb.mxu2 %v2728_v42  ;;  %v1520_v42 = vperm.slane %v1427_v38, 0 }
 0x218   :  { %1840 = vmatpush.bf16.msrb.mxu2 %v2727_v48 }
 0x21b   :  { %v1379_v43 = vpop.f32.mrf.mxu0  ;;  %v1393_v47 = vpop.f32.mrf.mxu1 }
 0x21c   :  { %v1380_v45 = vadd.f32 %v1379_v43, %v557_v26  ;;  %v2720_v43 = vld [vmem:[#allocation16 + $0x60] sm:$0xff]  ;;  %1841 = vmatpush.bf16.msrb.mxu2 %v2726_v55 }
 0x21d   :  { %1825 = vmatpush.bf16.msrb.mxu1 %v2720_v43 }
 0x21e   :  { %v1394_v63 = vadd.f32 %v1393_v47, %v1380_v45  ;;  %v2711_v45 = vld [vmem:[#allocation16 + $0x18] sm:$0xff] }
 0x21f   :  { %v2719_v47 = vld [vmem:[#allocation16 + $0x58] sm:$0xff]  ;;  %1812 = vmatpush.bf16.msrb.mxu0 %v2711_v45  ;;  %v1522_v45 = vperm.slane %v1427_v38, 2 }
 0x221   :  { %1826 = vmatpush.bf16.msrb.mxu1 %v2719_v47  ;;  %v1523_v47 = vperm.slane %v1427_v38, 3 }
 0x222   :  { %v1407_v57 = vpop.f32.mrf.mxu2  ;;  %v1421_v58 = vpop.f32.mrf.mxu3 }
 0x223   :  { %v1408_v2 = vadd.f32 %v1407_v57, %v1394_v63  ;;  %v1381_v4 = vpop.f32.mrf.mxu0  ;;  %v1395_v15 = vpop.f32.mrf.mxu1  ;;  %v2718_v63 = vld [vmem:[#allocation16 + $0x50] sm:$0xff]  ;;  %1813 = vmatpush.bf16.msrb.mxu0 %v2710_v53 }
 0x224   :  { %v1382_v3 = vadd.f32 %v1381_v4, %v557_v26  ;;  %v2738_v26 = vld [vmem:[#allocation16 + $0xf0] sm:$0xff]  ;;  %v2725_v4 = vld [vmem:[#allocation16 + $0x88] sm:$0xff] }
 0x225   :  { %v3266_v8 = vadd.f32 %v1421_v58, %v1408_v2  ;;  %1851 = vmatpush.bf16.msrb.mxu3 %v2738_v26  ;;  %v2734_v57 = vld [vmem:[#allocation16 + $0xd0] sm:$0xff]  ;;  %v2709_v58 = vld [vmem:[#allocation16 + $0x8] sm:$0xff]  ;;  %1827 = vmatpush.bf16.msrb.mxu1 %v2718_v63 }
 0x226   :  { %v1396_v54 = vadd.f32 %v1395_v15, %v1382_v3  ;;  %v2717_v2 = vld [vmem:[#allocation16 + $0x48] sm:$0xff]  ;;  %v2708_v3 = vld [vmem:[#allocation16] sm:$0xff]  ;;  %1842 = vmatpush.bf16.msrb.mxu2 %v2725_v4 }
 0x227   :  { %v1430_v12 = vadd.f32 %v1429_v10, %v3266_v8  ;;  %v1443_v22 = vmul.f32 %v3266_v8, %v3266_v8  ;;  %1814 = vmatpush.bf16.msrb.mxu0 %v2709_v58 }
 0x229   :  { %1431 = vadd.xlane.f32.xlu2 %v1430_v12  ;;  %v1450_v60 = vadd.f32 %v1449_v14, %v1443_v22  ;;  %1852 = vmatpush.bf16.msrb.mxu3 %v2737_v40  ;;  %v2716_v22 = vld [vmem:[#allocation16 + $0x40] sm:$0xff] }
 0x22a   :  { %v1409_v16 = vpop.f32.mrf.mxu2  ;;  %v1423_v0 = vpop.f32.mrf.mxu3  ;;  %1828 = vmatpush.bf16.msrb.mxu1 %v2717_v2  ;;  %v2724_v14 = vld [vmem:[#allocation16 + $0x80] sm:$0xff] }
 0x22b   :  { %v1410_v62 = vadd.f32 %v1409_v16, %v1396_v54  ;;  %1451 = vadd.xlane.f32.xlu0 %v1450_v60  ;;  %1815 = vmatpush.bf16.msrb.mxu0 %v2708_v3 }
 0x22c   :  { %1843 = vmatpush.bf16.msrb.mxu2 %v2724_v14 }
 0x22d   :  { %v3284_v18 = vadd.f32 %v1423_v0, %v1410_v62  ;;  %1853 = vmatpush.bf16.msrb.mxu3 %v2736_v44  ;;  %v1521_v44 = vperm.slane %v1427_v38, 1 }
 0x22e   :  { %1829 = vmatpush.bf16.msrb.mxu1 %v2716_v22 }
 0x22f   :  { %v1435_v21 = vadd.f32 %v1434_v19, %v3284_v18  ;;  %v1447_v23 = vmul.f32 %v3284_v18, %v3284_v18 }
 0x231   :  { %1436 = vadd.xlane.f32.xlu2 %v1435_v21  ;;  %v1455_v28 = vadd.f32 %v1454_v24, %v1447_v23  ;;  %1854 = vmatpush.bf16.msrb.mxu3 %v2735_v50  ;;  %v1426_v21 = vld [vmem:[#allocation13] sm:$0xf] }
 0x232   :  { %v1503_v33 = vperm.slane %v1426_v21, 0  ;;  %v1504_v32 = vperm.slane %v1426_v21, 1  ;;  %v1505_v25 = vperm.slane %v1426_v21, 2  ;;  %v1506_v27 = vperm.slane %v1426_v21, 3 }
 0x233   :  { %1456 = vadd.xlane.f32.xlu1 %v1455_v28 }
 0x235   :  { %1855 = vmatpush.bf16.msrb.mxu3 %v2734_v57 }
 0x239   :  { %1856 = vmatpush.bf16.msrb.mxu3 %v2733_v5 }
 0x23d   :  { %1857 = vmatpush.bf16.msrb.mxu3 %v2732_v29 }
 0x29c   :  { %v1432_v51 = vpop.xlane.xlu2 %1431 }
 0x29d   :  { %v3291_v52 = vmul.f32 %v1432_v51, %v3192_v39 }
 0x29e   :  { %v1452_v56 = vpop.xlane.xlu0 %1451 }
 0x29f   :  { %v1458_v59 = vmul.f32 %v1452_v56, %v3192_v39  ;;  %v1460_v1 = vmul.f32 %v3291_v52, %v3291_v52  ;;  %v1486_v28 = vsub.f32 %v3252_v46, %v3291_v52  ;;  %v1487_v30 = vsub.f32 %v3250_v34, %v3291_v52 }
 0x2a0   :  { %v1488_v35 = vsub.f32 %v3254_v49, %v3291_v52  ;;  %v1489_v36 = vsub.f32 %v3266_v8, %v3291_v52 }
 0x2a1   :  { %v1462_v6 = vsub.f32 %v1458_v59, %v1460_v1 }
 0x2a3   :  { %v1464_v10 = vadd.f32 1e-05, %v1462_v6 }
 0x2a4   :  { %v1437_v12 = vpop.xlane.xlu2 %1436 }
 0x2a5   :  { %v3297_v15 = vmul.f32 %v1437_v12, %v3192_v39  ;;  %2764 = vrsqrt.f32 %v1464_v10  ;;  %vm1472_vm9 = vweird.f32 %v1464_v10 }
 0x2a6   :  { %v1457_v54 = vpop.xlane.xlu1 %1456 }
 0x2a7   :  { %v1459_v60 = vmul.f32 %v1457_v54, %v3192_v39  ;;  %v1461_v16 = vmul.f32 %v3297_v15, %v3297_v15  ;;  %v1490_v52 = vsub.f32 %v3269_v11, %v3297_v15  ;;  %v1491_v53 = vsub.f32 %v3264_v7, %v3297_v15 }
 0x2a8   :  { %v1492_v63 = vsub.f32 %v3271_v9, %v3297_v15  ;;  %v1493_v55 = vsub.f32 %v3284_v18, %v3297_v15 }
 0x2a9   :  { %v1463_v13 = vsub.f32 %v1459_v60, %v1461_v16 }
 0x2ab   :  { %v2765_v61 = vpop.eup %2764  ;;  %v1465_v17 = vadd.f32 1e-05, %v1463_v13 }
 0x2ac   :  { %v1467_v62 = vmul.f32 %v2765_v61, %v1464_v10  ;;  %vm1473_vm8 = vweird.f32 %v2765_v61 }
 0x2ad   :  { %2766 = vrsqrt.f32 %v1465_v17  ;;  %vm1474_vm10 = vmor %vm1472_vm9, %vm1473_vm8  ;;  %vm1482_vm12 = vweird.f32 %v1465_v17 }
 0x2ae   :  { %v1468_v0 = vmul.f32 %v2765_v61, %v1467_v62 }
 0x2b0   :  { %v1469_v19 = vmul.f32 0.5, %v1468_v0 }
 0x2b2   :  { %v1470_v20 = vsub.f32 1.5, %v1469_v19 }
 0x2b3   :  { %v2767_v23 = vpop.eup %2766 }
 0x2b4   :  { %v1471_v24 = vmul.f32 %v2765_v61, %v1470_v20  ;;  %v1477_v39 = vmul.f32 %v2767_v23, %v1465_v17  ;;  %vm1483_vm11 = vweird.f32 %v2767_v23  ;;  %v2757_v20 = vld [vmem:[%s3335_s10] ss:$0 sm:$0xff]  ;;  %s3038_s10 = smov [#allocation17]  }
 0x2b5   :  { %vm1484_vm13 = vmor %vm1482_vm12, %vm1483_vm11  ;;  %s1872_s20 = sshll.u32 %s3038_s10, 4  ;;  %s1873_s20 = int_to_ptr.vmem [resolvable:$true] %s1872_s20 }
 0x2b6   :  { %v1475_v37 = vsel %vm1474_vm10, %v2765_v61, %v1471_v24  ;;  %v1478_v31 = vmul.f32 %v2767_v23, %v1477_v39 }
 0x2b7   :  { %v1494_v26 = vmul.f32 %v1486_v28, %v1475_v37  ;;  %v1495_v46 = vmul.f32 %v1487_v30, %v1475_v37  ;;  %v1496_v41 = vmul.f32 %v1488_v35, %v1475_v37  ;;  %v1497_v43 = vmul.f32 %v1489_v36, %v1475_v37 }
 0x2b8   :  { %v1479_v40 = vmul.f32 0.5, %v1478_v31 }
 0x2b9   :  { %v1511_v49 = vmul.f32 %v1503_v33, %v1494_v26  ;;  %v1512_v48 = vmul.f32 %v1504_v32, %v1495_v46  ;;  %v1513_v50 = vmul.f32 %v1505_v25, %v1496_v41  ;;  %v1514_v51 = vmul.f32 %v1506_v27, %v1497_v43 }
 0x2ba   :  { %v1480_v34 = vsub.f32 1.5, %v1479_v40 }
 0x2bb   :  { %v1528_v2 = vadd.f32 %v1520_v42, %v1511_v49  ;;  %v1529_v4 = vadd.f32 %v1521_v44, %v1512_v48  ;;  %v1530_v5 = vadd.f32 %v1522_v45, %v1513_v50  ;;  %v1531_v11 = vadd.f32 %v1523_v47, %v1514_v51 }
 0x2bc   :  { %v1481_v8 = vmul.f32 %v2767_v23, %v1480_v34 }
 0x2bd   :  { %v1536_v18 = vmax.f32 %v1528_v2, 0.0  ;;  %v1537_v15 = vmax.f32 %v1529_v4, 0.0  ;;  %v1538_v29 = vmax.f32 %v1530_v5, 0.0  ;;  %v1539_v54 = vmax.f32 %v1531_v11, 0.0 }
 0x2be   :  { %v1485_v56 = vsel %vm1484_vm13, %v2767_v23, %v1481_v8 }
 0x2bf   :  { %v1498_v57 = vmul.f32 %v1490_v52, %v1485_v56  ;;  %v1499_v58 = vmul.f32 %v1491_v53, %v1485_v56  ;;  %v1500_v59 = vmul.f32 %v1492_v63, %v1485_v56  ;;  %v1501_v1 = vmul.f32 %v1493_v55, %v1485_v56 }
 0x2c1   :  { %v1515_v6 = vmul.f32 %v1503_v33, %v1498_v57  ;;  %v1516_v3 = vmul.f32 %v1504_v32, %v1499_v58  ;;  %v1517_v7 = vmul.f32 %v1505_v25, %v1500_v59  ;;  %v1518_v10 = vmul.f32 %v1506_v27, %v1501_v1 }
 0x2c3   :  { %v1532_v12 = vadd.f32 %v1520_v42, %v1515_v6  ;;  %v1533_v9 = vadd.f32 %v1521_v44, %v1516_v3  ;;  %v1534_v22 = vadd.f32 %v1522_v45, %v1517_v7  ;;  %v1535_v14 = vadd.f32 %v1523_v47, %v1518_v10 }
 0x2c5   :  { %v1540_v60 = vmax.f32 %v1532_v12, 0.0  ;;  %v1541_v16 = vmax.f32 %v1533_v9, 0.0  ;;  %v1542_v13 = vmax.f32 %v1534_v22, 0.0  ;;  %v1543_v61 = vmax.f32 %v1535_v14, 0.0 }
 0x2c7   :  { %v1544_v17 = vpack.c.bf16 %v1540_v60, %v1536_v18  ;;  %v1545_v62 = vpack.c.bf16 %v1541_v16, %v1537_v15  ;;  %v1546_v0 = vpack.c.bf16 %v1542_v13, %v1538_v29  ;;  %v1547_v19 = vpack.c.bf16 %v1543_v61, %v1539_v54 }
 0x2c9   :  { %1816 = vmatmul.bf16.vlgmr.msrb.gmra.mxu0 %v1544_v17  ;;  %1830 = vmatmul.bf16.vlgmr.msrb.gmra.mxu1 %v1545_v62 }
 0x2ca   :  { %1844 = vmatmul.bf16.vlgmr.msrb.gmra.mxu2 %v1546_v0  ;;  %1858 = vmatmul.bf16.vlgmr.msrb.gmra.mxu3 %v1547_v19 }
 0x346   :  { %v1817_v21 = vpop.f32.mrf.mxu0  ;;  %v1831_v24 = vpop.f32.mrf.mxu1 }
 0x347   :  { %v1818_v23 = vadd.f32 %v2757_v20, %v1817_v21 }
 0x349   :  { %v1832_v39 = vadd.f32 %v1831_v24, %v1818_v23 }
 0x34d   :  { %v1845_v28 = vpop.f32.mrf.mxu2  ;;  %v1859_v30 = vpop.f32.mrf.mxu3 }
 0x34e   :  { %v1846_v33 = vadd.f32 %v1845_v28, %v1832_v39  ;;  %v1819_v35 = vpop.f32.mrf.mxu0  ;;  %v1833_v31 = vpop.f32.mrf.mxu1 }
 0x34f   :  { %v1820_v37 = vadd.f32 %v2757_v20, %v1819_v35 }
 0x350   :  { %v1860_v36 = vadd.f32 %v1859_v30, %v1846_v33 }
 0x351   :  { %v1834_v38 = vadd.f32 %v1833_v31, %v1820_v37 }
 0x352   :  { %2768 = vtanh.f32 %v1860_v36 }
 0x355   :  { %v1847_v26 = vpop.f32.mrf.mxu2  ;;  %v1861_v25 = vpop.f32.mrf.mxu3 }
 0x356   :  { %v1848_v32 = vadd.f32 %v1847_v26, %v1834_v38 }
 0x358   :  { %v2769_v27 = vpop.eup %2768  ;;  %v1862_v40 = vadd.f32 %v1861_v25, %v1848_v32 }
 0x359   :  { %1866 = vst [vmem:[#allocation17] sm:$0xff] %v2769_v27 }
 0x35a   :  { %2770 = vtanh.f32 %v1862_v40 }
 0x360   :  { %v2771_v46 = vpop.eup %2770 }
 0x361   :  { %1867 = vst [vmem:[#allocation17 + $0x8] sm:$0xff] %v2771_v46 }
 0x362   :  { %1880 = dma.vmem_to_hbm [thread:$0]  %s1873_s20, 256, %s1875_s22, [#allocation4], %s3039_s23, %s3039_s23, %s3040_s8  }
 0x363   :  { %3022 = dma.done.wait [#allocation4], 256  }
 0x364   :  { %3023 = vsyncadd [#allocation4], 4294967040 }
 0x365   :  { %1885 = vsyncpa [#allocation3], 1 }
 0x366   :  { %1886 = vsyncpa [#allocation6], 1 }
 0x367   :  { %1887 = vsyncpa [#allocation9], 1 }
 0x368   :  { %1888 = vsyncpa [#allocation12], 1 }
 0x369   :  { %1889 = vsyncpa [#allocation15], 1 }
 0x36a   :  { %1890 = vsyncpa [#allocation4], 1 }

</bundles_post_ra>
